<compile_context>
chip_gen: v7x
topology: tpu7x:2x2x1
jax: 0.10.0
libtpu: 0.0.40
codegen_flags: <defaults>
</compile_context>

<pallas_src>
import math

import jax
import jax.numpy as jnp
from jax.experimental import pallas as pl
from jax.experimental.pallas import tpu as pltpu

# ---- small synthetic BERT config (scaled down from bert-base 768/12/12) ----
B = 2            # batch
S = 8            # sequence length
H = 128          # hidden size ("feature_dim")
NH = 4           # attention heads
HD = H // NH     # head dim
FF = 256         # FFN intermediate size
L = 2            # encoder layers
VOCAB = 100
TYPE_VOCAB = 2
MAX_POS = 16
LN_EPS = 1e-12   # BERT LayerNorm eps


# ------------------------------ kernel --------------------------------------
def _ln(x, gamma, beta):
    mean = jnp.mean(x, axis=-1, keepdims=True)
    var = jnp.mean((x - mean) ** 2, axis=-1, keepdims=True)
    return (x - mean) * jax.lax.rsqrt(var + LN_EPS) * gamma + beta


def fused_bert_kernel(
        # constant inputs (same block every grid step)
        emb_ref, bias_ref, emb_g_ref, emb_b_ref,
        # per-layer weights (stacked over L, streamed one layer per step)
        wqkv_ref, bqkv_ref, wo_ref, bo_ref, g1_ref, be1_ref,
        wi_ref, bi_ref, wf_ref, bf_ref, g2_ref, be2_ref,
        # pooler + ranking head weights
        wp_ref, bp_ref, wd_ref, bd_ref,
        # outputs
        pooled_ref, score_ref,
        # scratch: activation resident in VMEM across the whole layer loop
        x_sc):
    l = pl.program_id(0)

    # ---- embeddings LayerNorm (first grid step only) ----
    @pl.when(l == 0)
    def _():
        emb = emb_ref[...].reshape(B * S, H)          # (B*S, H) f32
        x_sc[...] = _ln(emb, emb_g_ref[...], emb_b_ref[...])

    x = x_sc[...]                                     # (B*S, H) f32
    x_bf = x.astype(jnp.bfloat16)

    # ---- fused QKV projection: one (B*S, H) @ (H, 3H) matmul ----
    qkv = jnp.dot(x_bf, wqkv_ref[0],
                  preferred_element_type=jnp.float32) + bqkv_ref[0]
    q, k, v = qkv[:, :H], qkv[:, H:2 * H], qkv[:, 2 * H:]

    # ---- multi-head self-attention ----
    scale = 1.0 / math.sqrt(HD)
    ctx_rows = []
    for b in range(B):                                # static unroll (B=2)
        rows = slice(b * S, (b + 1) * S)
        qb = (q[rows] * scale).astype(jnp.bfloat16)   # (S, H)
        kb = k[rows].astype(jnp.bfloat16)
        vb = v[rows].astype(jnp.bfloat16)
        bias_b = bias_ref[b]                          # (1, S) additive mask
        heads = []
        for h in range(NH):                           # static unroll (NH=4)
            cols = slice(h * HD, (h + 1) * HD)
            s = jax.lax.dot_general(                  # q_h @ k_h^T
                qb[:, cols], kb[:, cols],
                dimension_numbers=(((1,), (1,)), ((), ())),
                preferred_element_type=jnp.float32) + bias_b
            s = s - jnp.max(s, axis=-1, keepdims=True)
            p = jnp.exp(s)
            p = p * pl.reciprocal(jnp.sum(p, axis=-1, keepdims=True),
                                  approx=True)
            heads.append(jnp.dot(p.astype(jnp.bfloat16), vb[:, cols],
                                 preferred_element_type=jnp.float32))
        ctx_rows.append(jnp.concatenate(heads, axis=-1))     # (S, H)
    ctx = jnp.concatenate(ctx_rows, axis=0)                  # (B*S, H) f32

    # single K=128 output projection (== concat(heads) @ Wo)
    attn = jnp.dot(ctx.astype(jnp.bfloat16), wo_ref[0],
                   preferred_element_type=jnp.float32) + bo_ref[0]
    h1 = _ln(x + attn, g1_ref[0], be1_ref[0])

    # ---- FFN ----
    inter = jnp.dot(h1.astype(jnp.bfloat16), wi_ref[0],
                    preferred_element_type=jnp.float32) + bi_ref[0]
    # TODO(synk): HF BERT uses exact erf-GELU; tanh approximation used here.
    inter = jax.nn.gelu(inter, approximate=True)
    ffn = jnp.dot(inter.astype(jnp.bfloat16), wf_ref[0],
                  preferred_element_type=jnp.float32) + bf_ref[0]
    x_new = _ln(h1 + ffn, g2_ref[0], be2_ref[0])
    x_sc[...] = x_new                                 # carry to next layer

    # ---- pooler + ranking head (last grid step only) ----
    @pl.when(l == pl.num_programs(0) - 1)
    def _():
        # CLS token of each batch element: rows 0, S, 2S, ...
        cls = jnp.concatenate(
            [x_new[b * S:b * S + 1, :] for b in range(B)], axis=0)  # (B, H)
        pooled = jnp.tanh(
            jnp.dot(cls.astype(jnp.bfloat16), wp_ref[...],
                    preferred_element_type=jnp.float32) + bp_ref[...])
        pooled_ref[...] = pooled                      # output[1]
        score_ref[...] = jnp.tanh(
            jnp.dot(pooled.astype(jnp.bfloat16), wd_ref[...],
                    preferred_element_type=jnp.float32) + bd_ref[...])


# ------------------------------ wrapper --------------------------------------
def _full_spec(shape):
    return pl.BlockSpec(shape, lambda l: (0,) * len(shape))


def _per_layer_spec(arr):
    blk = (1,) + arr.shape[1:]
    ndim = arr.ndim
    return pl.BlockSpec(blk, lambda l: (l,) + (0,) * (ndim - 1))


def bert_for_ranking_forward(params, inst, tok, mask, raw_score=None):
    # Embedding gather is glue (plain JAX); everything else runs in ONE
    # fused Pallas kernel.
    emb = (params["word_emb"][inst]
           + params["pos_emb"][None, :S, :]
           + params["type_emb"][tok]).astype(jnp.float32)            # (B,S,H)
    # additive attention mask (B, 1, S): 0 for keep, -1e4 for pad
    bias = ((1.0 - mask.astype(jnp.float32)) * -10000.0)[:, None, :]

    layer_names = ("wqkv", "bqkv", "wo", "bo", "g1", "be1",
                   "wi", "bi", "wf", "bf", "g2", "be2")
    layer_w = [params[n] for n in layer_names]
    head_w = [params[n] for n in ("wp", "bp", "wd", "bd")]

    in_specs = ([_full_spec(emb.shape), _full_spec(bias.shape),
                 _full_spec(params["emb_g"].shape),
                 _full_spec(params["emb_b"].shape)]
                + [_per_layer_spec(w) for w in layer_w]
                + [_full_spec(w.shape) for w in head_w])

    pooled, score = pl.pallas_call(
        fused_bert_kernel,
        out_shape=(jax.ShapeDtypeStruct((B, H), jnp.float32),
                   jax.ShapeDtypeStruct((B, 1), jnp.float32)),
        grid=(L,),
        in_specs=in_specs,
        out_specs=(pl.BlockSpec((B, H), lambda l: (0, 0)),
                   pl.BlockSpec((B, 1), lambda l: (0, 0))),
        scratch_shapes=[pltpu.VMEM((B * S, H), jnp.float32)],
        compiler_params=pltpu.CompilerParams(
            dimension_semantics=("arbitrary",)),
    )(emb, bias, params["emb_g"], params["emb_b"], *layer_w, *head_w)

    # score = tanh(dense(output[1])).squeeze(-1); returns (score, output[1])
    return score[:, 0], pooled


# ------------------------------ parameters ----------------------------------
def init_params(key):
    keys = iter(jax.random.split(key, 64))

    def nrm(shape, scale=0.02, dtype=jnp.float32):
        return (jax.random.normal(next(keys), shape, jnp.float32)
                * scale).astype(dtype)

    bf16 = jnp.bfloat16
    return {
        "word_emb": nrm((VOCAB, H)),
        "pos_emb":  nrm((MAX_POS, H)),
        "type_emb": nrm((TYPE_VOCAB, H)),
        "emb_g": jnp.ones((1, H), jnp.float32),
        "emb_b": jnp.zeros((1, H), jnp.float32),
        # per-layer weights stacked over L; matmul weights stored in bf16
        "wqkv": nrm((L, H, 3 * H), dtype=bf16),
        "bqkv": jnp.zeros((L, 1, 3 * H), jnp.float32),
        "wo":   nrm((L, H, H), dtype=bf16),
        "bo":   jnp.zeros((L, 1, H), jnp.float32),
        "g1":   jnp.ones((L, 1, H), jnp.float32),
        "be1":  jnp.zeros((L, 1, H), jnp.float32),
        "wi":   nrm((L, H, FF), dtype=bf16),
        "bi":   jnp.zeros((L, 1, FF), jnp.float32),
        "wf":   nrm((L, FF, H), dtype=bf16),
        "bf":   jnp.zeros((L, 1, H), jnp.float32),
        "g2":   jnp.ones((L, 1, H), jnp.float32),
        "be2":  jnp.zeros((L, 1, H), jnp.float32),
        # BERT pooler: output[1] = tanh(cls @ Wp + bp)
        "wp": nrm((H, H), dtype=bf16), "bp": jnp.zeros((1, H), jnp.float32),
        # ranking head: self.dense = nn.Linear(feature_dim, 1)
        "wd": nrm((H, 1), dtype=bf16), "bd": jnp.zeros((1, 1), jnp.float32),
        # TODO(synk): self.dense_p (feature_dim+1 -> 1) belongs to the broken
        # `raw_score`/`score_feature` branch and is therefore not built.
    }


if __name__ == "__main__":
    root = jax.random.PRNGKey(0)
    pkey, ikey, tkey = jax.random.split(root, 3)
    params = init_params(pkey)

    inst = jax.random.randint(ikey, (B, S), 0, VOCAB, dtype=jnp.int32)
    tok = jax.random.randint(tkey, (B, S), 0, TYPE_VOCAB, dtype=jnp.int32)
    mask = jnp.ones((B, S), jnp.int32)

    score, pooled = bert_for_ranking_forward(params, inst, tok, mask)
    jax.block_until_ready((score, pooled))

    assert score.shape == (B,) and pooled.shape == (B, H)
    assert bool(jnp.all(jnp.isfinite(score))) and bool(jnp.all(jnp.isfinite(pooled)))
    print("KERNEL_OK")
</pallas_src>

<mosaic_0001>
module attributes {stable_mosaic.version = 11 : i64} {
  func.func @fused_bert_kernel(%arg0: i32, %arg1: memref<2x8x128xf32, #tpu.memory_space<vmem>>, %arg2: memref<2x1x8xf32, #tpu.memory_space<vmem>>, %arg3: memref<1x128xf32, #tpu.memory_space<vmem>>, %arg4: memref<1x128xf32, #tpu.memory_space<vmem>>, %arg5: memref<1x128x384xbf16, #tpu.memory_space<vmem>>, %arg6: memref<1x1x384xf32, #tpu.memory_space<vmem>>, %arg7: memref<1x128x128xbf16, #tpu.memory_space<vmem>>, %arg8: memref<1x1x128xf32, #tpu.memory_space<vmem>>, %arg9: memref<1x1x128xf32, #tpu.memory_space<vmem>>, %arg10: memref<1x1x128xf32, #tpu.memory_space<vmem>>, %arg11: memref<1x128x256xbf16, #tpu.memory_space<vmem>>, %arg12: memref<1x1x256xf32, #tpu.memory_space<vmem>>, %arg13: memref<1x256x128xbf16, #tpu.memory_space<vmem>>, %arg14: memref<1x1x128xf32, #tpu.memory_space<vmem>>, %arg15: memref<1x1x128xf32, #tpu.memory_space<vmem>>, %arg16: memref<1x1x128xf32, #tpu.memory_space<vmem>>, %arg17: memref<128x128xbf16, #tpu.memory_space<vmem>>, %arg18: memref<1x128xf32, #tpu.memory_space<vmem>>, %arg19: memref<128x1xbf16, #tpu.memory_space<vmem>>, %arg20: memref<1x1xf32, #tpu.memory_space<vmem>>, %arg21: memref<2x128xf32, #tpu.memory_space<vmem>>, %arg22: memref<2x1xf32, #tpu.memory_space<vmem>>, %arg23: memref<16x128xf32, #tpu.memory_space<vmem>>) attributes {dimension_semantics = [#tpu.dimension_semantics<arbitrary>], iteration_bounds = array<i64: 2>, scalar_prefetch = 0 : i64, scratch_operands = 1 : i64, tpu.core_type = #tpu.core_type<tc>, window_params = [{pipeline_mode = #tpu.pipeline_mode<synchronous>, transform_indices = @transform_0, window_bounds = array<i64: 2, 8, 128>}, {pipeline_mode = #tpu.pipeline_mode<synchronous>, transform_indices = @transform_1, window_bounds = array<i64: 2, 1, 8>}, {pipeline_mode = #tpu.pipeline_mode<synchronous>, transform_indices = @transform_2, window_bounds = array<i64: 1, 128>}, {pipeline_mode = #tpu.pipeline_mode<synchronous>, transform_indices = @transform_3, window_bounds = array<i64: 1, 128>}, {transform_indices = @transform_4, window_bounds = array<i64: 1, 128, 384>}, {transform_indices = @transform_5, window_bounds = array<i64: 1, 1, 384>}, {transform_indices = @transform_6, window_bounds = array<i64: 1, 128, 128>}, {transform_indices = @transform_7, window_bounds = array<i64: 1, 1, 128>}, {transform_indices = @transform_8, window_bounds = array<i64: 1, 1, 128>}, {transform_indices = @transform_9, window_bounds = array<i64: 1, 1, 128>}, {transform_indices = @transform_10, window_bounds = array<i64: 1, 128, 256>}, {transform_indices = @transform_11, window_bounds = array<i64: 1, 1, 256>}, {transform_indices = @transform_12, window_bounds = array<i64: 1, 256, 128>}, {transform_indices = @transform_13, window_bounds = array<i64: 1, 1, 128>}, {transform_indices = @transform_14, window_bounds = array<i64: 1, 1, 128>}, {transform_indices = @transform_15, window_bounds = array<i64: 1, 1, 128>}, {pipeline_mode = #tpu.pipeline_mode<synchronous>, transform_indices = @transform_16, window_bounds = array<i64: 128, 128>}, {pipeline_mode = #tpu.pipeline_mode<synchronous>, transform_indices = @transform_17, window_bounds = array<i64: 1, 128>}, {pipeline_mode = #tpu.pipeline_mode<synchronous>, transform_indices = @transform_18, window_bounds = array<i64: 128, 1>}, {pipeline_mode = #tpu.pipeline_mode<synchronous>, transform_indices = @transform_19, window_bounds = array<i64: 1, 1>}, {pipeline_mode = #tpu.pipeline_mode<synchronous>, transform_indices = @transform_20, window_bounds = array<i64: 2, 128>}, {pipeline_mode = #tpu.pipeline_mode<synchronous>, transform_indices = @transform_21, window_bounds = array<i64: 2, 1>}]} {
    %c0_i32 = arith.constant 0 : i32
    %0 = arith.cmpi eq, %arg0, %c0_i32 : i32
    %1 = arith.extui %0 : i1 to i32
    %c0_i32_0 = arith.constant 0 : i32
    %2 = arith.cmpi ne, %1, %c0_i32_0 : i32
    scf.if %2 {
      %c0_97 = arith.constant 0 : index
      %c0_98 = arith.constant 0 : index
      %c0_99 = arith.constant 0 : index
      %277 = vector.load %arg1[%c0_97, %c0_98, %c0_99] : memref<2x8x128xf32, #tpu.memory_space<vmem>>, vector<2x8x128xf32>
      %278 = vector.shape_cast %277 : vector<2x8x128xf32> to vector<16x128xf32>
      %c0_100 = arith.constant 0 : index
      %c0_101 = arith.constant 0 : index
      %279 = vector.load %arg3[%c0_100, %c0_101] : memref<1x128xf32, #tpu.memory_space<vmem>>, vector<1x128xf32>
      %c0_102 = arith.constant 0 : index
      %c0_103 = arith.constant 0 : index
      %280 = vector.load %arg4[%c0_102, %c0_103] : memref<1x128xf32, #tpu.memory_space<vmem>>, vector<1x128xf32>
      %cst_104 = arith.constant dense<0.000000e+00> : vector<16xf32>
      %281 = vector.multi_reduction <add>, %278, %cst_104 [1] : vector<16x128xf32> to vector<16xf32>
      %282 = vector.shape_cast %281 : vector<16xf32> to vector<16x1xf32>
      %cst_105 = arith.constant 1.280000e+02 : f32
      %283 = vector.broadcast %cst_105 : f32 to vector<16x1xf32>
      %284 = arith.divf %282, %283 : vector<16x1xf32>
      %285 = vector.broadcast %284 : vector<16x1xf32> to vector<16x128xf32>
      %286 = arith.subf %278, %285 : vector<16x128xf32>
      %287 = arith.mulf %286, %286 : vector<16x128xf32>
      %cst_106 = arith.constant dense<0.000000e+00> : vector<16xf32>
      %288 = vector.multi_reduction <add>, %287, %cst_106 [1] : vector<16x128xf32> to vector<16xf32>
      %289 = vector.shape_cast %288 : vector<16xf32> to vector<16x1xf32>
      %cst_107 = arith.constant 1.280000e+02 : f32
      %290 = vector.broadcast %cst_107 : f32 to vector<16x1xf32>
      %291 = arith.divf %289, %290 : vector<16x1xf32>
      %292 = vector.broadcast %284 : vector<16x1xf32> to vector<16x128xf32>
      %293 = arith.subf %278, %292 : vector<16x128xf32>
      %cst_108 = arith.constant 9.99999996E-13 : f32
      %294 = vector.broadcast %cst_108 : f32 to vector<16x1xf32>
      %295 = arith.addf %291, %294 : vector<16x1xf32>
      %296 = math.rsqrt %295 : vector<16x1xf32>
      %297 = vector.broadcast %296 : vector<16x1xf32> to vector<16x128xf32>
      %298 = arith.mulf %293, %297 : vector<16x128xf32>
      %299 = vector.broadcast %279 : vector<1x128xf32> to vector<16x128xf32>
      %300 = arith.mulf %298, %299 : vector<16x128xf32>
      %301 = vector.broadcast %280 : vector<1x128xf32> to vector<16x128xf32>
      %302 = arith.addf %300, %301 : vector<16x128xf32>
      %c0_109 = arith.constant 0 : index
      %c0_110 = arith.constant 0 : index
      %303 = vector.load %arg23[%c0_109, %c0_110] : memref<16x128xf32, #tpu.memory_space<vmem>>, vector<16x128xf32>
      tpu.vector_store %arg23[%c0_109, %c0_110], %302 {strides = array<i32>} : memref<16x128xf32, #tpu.memory_space<vmem>>, vector<16x128xf32>,
    } else {
    }
    %c0 = arith.constant 0 : index
    %c0_1 = arith.constant 0 : index
    %3 = vector.load %arg23[%c0, %c0_1] : memref<16x128xf32, #tpu.memory_space<vmem>>, vector<16x128xf32>
    %4 = arith.truncf %3 : vector<16x128xf32> to vector<16x128xbf16>
    %c0_2 = arith.constant 0 : index
    %c0_3 = arith.constant 0 : index
    %c0_4 = arith.constant 0 : index
    %5 = vector.load %arg5[%c0_2, %c0_3, %c0_4] : memref<1x128x384xbf16, #tpu.memory_space<vmem>>, vector<1x128x384xbf16>
    %6 = vector.shape_cast %5 : vector<1x128x384xbf16> to vector<128x384xbf16>
    %cst = arith.constant dense<0.000000e+00> : vector<16x384xf32>
    %7 = tpu.matmul %4, %6, %cst {dimension_numbers = #tpu.dot_dimension_numbers<[1], [0], [0], [1], [0, 0, 1, 1], [], []>} : vector<16x128xbf16>, vector<128x384xbf16>, vector<16x384xf32> -> vector<16x384xf32>
    %c0_5 = arith.constant 0 : index
    %c0_6 = arith.constant 0 : index
    %c0_7 = arith.constant 0 : index
    %8 = vector.load %arg6[%c0_5, %c0_6, %c0_7] : memref<1x1x384xf32, #tpu.memory_space<vmem>>, vector<1x1x384xf32>
    %9 = vector.shape_cast %8 : vector<1x1x384xf32> to vector<1x384xf32>
    %10 = vector.broadcast %9 : vector<1x384xf32> to vector<16x384xf32>
    %11 = arith.addf %7, %10 : vector<16x384xf32>
    %12 = vector.extract_strided_slice %11 {offsets = [0, 0], sizes = [16, 128], strides = [1, 1]} : vector<16x384xf32> to vector<16x128xf32>
    %13 = vector.extract_strided_slice %11 {offsets = [0, 128], sizes = [16, 128], strides = [1, 1]} : vector<16x384xf32> to vector<16x128xf32>
    %14 = vector.extract_strided_slice %11 {offsets = [0, 256], sizes = [16, 128], strides = [1, 1]} : vector<16x384xf32> to vector<16x128xf32>
    %15 = vector.extract_strided_slice %12 {offsets = [0, 0], sizes = [8, 128], strides = [1, 1]} : vector<16x128xf32> to vector<8x128xf32>
    %cst_8 = arith.constant 0.176776692 : f32
    %16 = vector.broadcast %cst_8 : f32 to vector<8x128xf32>
    %17 = arith.mulf %15, %16 : vector<8x128xf32>
    %18 = arith.truncf %17 : vector<8x128xf32> to vector<8x128xbf16>
    %19 = vector.extract_strided_slice %13 {offsets = [0, 0], sizes = [8, 128], strides = [1, 1]} : vector<16x128xf32> to vector<8x128xf32>
    %20 = arith.truncf %19 : vector<8x128xf32> to vector<8x128xbf16>
    %21 = vector.extract_strided_slice %14 {offsets = [0, 0], sizes = [8, 128], strides = [1, 1]} : vector<16x128xf32> to vector<8x128xf32>
    %22 = arith.truncf %21 : vector<8x128xf32> to vector<8x128xbf16>
    %c0_9 = arith.constant 0 : index
    %c0_10 = arith.constant 0 : index
    %c0_11 = arith.constant 0 : index
    %23 = vector.load %arg2[%c0_9, %c0_10, %c0_11] : memref<2x1x8xf32, #tpu.memory_space<vmem>>, vector<1x1x8xf32>
    %24 = vector.shape_cast %23 : vector<1x1x8xf32> to vector<1x8xf32>
    %25 = vector.extract_strided_slice %18 {offsets = [0, 0], sizes = [8, 32], strides = [1, 1]} : vector<8x128xbf16> to vector<8x32xbf16>
    %26 = vector.extract_strided_slice %20 {offsets = [0, 0], sizes = [8, 32], strides = [1, 1]} : vector<8x128xbf16> to vector<8x32xbf16>
    %cst_12 = arith.constant dense<0.000000e+00> : vector<8x8xf32>
    %27 = tpu.matmul %25, %26, %cst_12 {dimension_numbers = #tpu.dot_dimension_numbers<[1], [1], [0], [0], [0, 0, 1, 0], [], []>} : vector<8x32xbf16>, vector<8x32xbf16>, vector<8x8xf32> -> vector<8x8xf32>
    %28 = vector.broadcast %24 : vector<1x8xf32> to vector<8x8xf32>
    %29 = arith.addf %27, %28 : vector<8x8xf32>
    %cst_13 = arith.constant dense<0xFF800000> : vector<8xf32>
    %30 = vector.multi_reduction <maximumf>, %29, %cst_13 [1] : vector<8x8xf32> to vector<8xf32>
    %31 = vector.shape_cast %30 : vector<8xf32> to vector<8x1xf32>
    %32 = vector.broadcast %31 : vector<8x1xf32> to vector<8x8xf32>
    %33 = arith.subf %29, %32 : vector<8x8xf32>
    %34 = math.exp %33 : vector<8x8xf32>
    %cst_14 = arith.constant dense<0.000000e+00> : vector<8xf32>
    %35 = vector.multi_reduction <add>, %34, %cst_14 [1] : vector<8x8xf32> to vector<8xf32>
    %36 = vector.shape_cast %35 : vector<8xf32> to vector<8x1xf32>
    %37 = tpu.reciprocal %36 {approx = true} : vector<8x1xf32> -> vector<8x1xf32>
    %38 = vector.broadcast %37 : vector<8x1xf32> to vector<8x8xf32>
    %39 = arith.mulf %34, %38 : vector<8x8xf32>
    %40 = arith.truncf %39 : vector<8x8xf32> to vector<8x8xbf16>
    %41 = vector.extract_strided_slice %22 {offsets = [0, 0], sizes = [8, 32], strides = [1, 1]} : vector<8x128xbf16> to vector<8x32xbf16>
    %cst_15 = arith.constant dense<0.000000e+00> : vector<8x32xf32>
    %42 = tpu.matmul %40, %41, %cst_15 {dimension_numbers = #tpu.dot_dimension_numbers<[1], [0], [0], [1], [0, 0, 1, 1], [], []>} : vector<8x8xbf16>, vector<8x32xbf16>, vector<8x32xf32> -> vector<8x32xf32>
    %43 = vector.extract_strided_slice %18 {offsets = [0, 32], sizes = [8, 32], strides = [1, 1]} : vector<8x128xbf16> to vector<8x32xbf16>
    %44 = vector.extract_strided_slice %20 {offsets = [0, 32], sizes = [8, 32], strides = [1, 1]} : vector<8x128xbf16> to vector<8x32xbf16>
    %cst_16 = arith.constant dense<0.000000e+00> : vector<8x8xf32>
    %45 = tpu.matmul %43, %44, %cst_16 {dimension_numbers = #tpu.dot_dimension_numbers<[1], [1], [0], [0], [0, 0, 1, 0], [], []>} : vector<8x32xbf16>, vector<8x32xbf16>, vector<8x8xf32> -> vector<8x8xf32>
    %46 = vector.broadcast %24 : vector<1x8xf32> to vector<8x8xf32>
    %47 = arith.addf %45, %46 : vector<8x8xf32>
    %cst_17 = arith.constant dense<0xFF800000> : vector<8xf32>
    %48 = vector.multi_reduction <maximumf>, %47, %cst_17 [1] : vector<8x8xf32> to vector<8xf32>
    %49 = vector.shape_cast %48 : vector<8xf32> to vector<8x1xf32>
    %50 = vector.broadcast %49 : vector<8x1xf32> to vector<8x8xf32>
    %51 = arith.subf %47, %50 : vector<8x8xf32>
    %52 = math.exp %51 : vector<8x8xf32>
    %cst_18 = arith.constant dense<0.000000e+00> : vector<8xf32>
    %53 = vector.multi_reduction <add>, %52, %cst_18 [1] : vector<8x8xf32> to vector<8xf32>
    %54 = vector.shape_cast %53 : vector<8xf32> to vector<8x1xf32>
    %55 = tpu.reciprocal %54 {approx = true} : vector<8x1xf32> -> vector<8x1xf32>
    %56 = vector.broadcast %55 : vector<8x1xf32> to vector<8x8xf32>
    %57 = arith.mulf %52, %56 : vector<8x8xf32>
    %58 = arith.truncf %57 : vector<8x8xf32> to vector<8x8xbf16>
    %59 = vector.extract_strided_slice %22 {offsets = [0, 32], sizes = [8, 32], strides = [1, 1]} : vector<8x128xbf16> to vector<8x32xbf16>
    %cst_19 = arith.constant dense<0.000000e+00> : vector<8x32xf32>
    %60 = tpu.matmul %58, %59, %cst_19 {dimension_numbers = #tpu.dot_dimension_numbers<[1], [0], [0], [1], [0, 0, 1, 1], [], []>} : vector<8x8xbf16>, vector<8x32xbf16>, vector<8x32xf32> -> vector<8x32xf32>
    %61 = vector.extract_strided_slice %18 {offsets = [0, 64], sizes = [8, 32], strides = [1, 1]} : vector<8x128xbf16> to vector<8x32xbf16>
    %62 = vector.extract_strided_slice %20 {offsets = [0, 64], sizes = [8, 32], strides = [1, 1]} : vector<8x128xbf16> to vector<8x32xbf16>
    %cst_20 = arith.constant dense<0.000000e+00> : vector<8x8xf32>
    %63 = tpu.matmul %61, %62, %cst_20 {dimension_numbers = #tpu.dot_dimension_numbers<[1], [1], [0], [0], [0, 0, 1, 0], [], []>} : vector<8x32xbf16>, vector<8x32xbf16>, vector<8x8xf32> -> vector<8x8xf32>
    %64 = vector.broadcast %24 : vector<1x8xf32> to vector<8x8xf32>
    %65 = arith.addf %63, %64 : vector<8x8xf32>
    %cst_21 = arith.constant dense<0xFF800000> : vector<8xf32>
    %66 = vector.multi_reduction <maximumf>, %65, %cst_21 [1] : vector<8x8xf32> to vector<8xf32>
    %67 = vector.shape_cast %66 : vector<8xf32> to vector<8x1xf32>
    %68 = vector.broadcast %67 : vector<8x1xf32> to vector<8x8xf32>
    %69 = arith.subf %65, %68 : vector<8x8xf32>
    %70 = math.exp %69 : vector<8x8xf32>
    %cst_22 = arith.constant dense<0.000000e+00> : vector<8xf32>
    %71 = vector.multi_reduction <add>, %70, %cst_22 [1] : vector<8x8xf32> to vector<8xf32>
    %72 = vector.shape_cast %71 : vector<8xf32> to vector<8x1xf32>
    %73 = tpu.reciprocal %72 {approx = true} : vector<8x1xf32> -> vector<8x1xf32>
    %74 = vector.broadcast %73 : vector<8x1xf32> to vector<8x8xf32>
    %75 = arith.mulf %70, %74 : vector<8x8xf32>
    %76 = arith.truncf %75 : vector<8x8xf32> to vector<8x8xbf16>
    %77 = vector.extract_strided_slice %22 {offsets = [0, 64], sizes = [8, 32], strides = [1, 1]} : vector<8x128xbf16> to vector<8x32xbf16>
    %cst_23 = arith.constant dense<0.000000e+00> : vector<8x32xf32>
    %78 = tpu.matmul %76, %77, %cst_23 {dimension_numbers = #tpu.dot_dimension_numbers<[1], [0], [0], [1], [0, 0, 1, 1], [], []>} : vector<8x8xbf16>, vector<8x32xbf16>, vector<8x32xf32> -> vector<8x32xf32>
    %79 = vector.extract_strided_slice %18 {offsets = [0, 96], sizes = [8, 32], strides = [1, 1]} : vector<8x128xbf16> to vector<8x32xbf16>
    %80 = vector.extract_strided_slice %20 {offsets = [0, 96], sizes = [8, 32], strides = [1, 1]} : vector<8x128xbf16> to vector<8x32xbf16>
    %cst_24 = arith.constant dense<0.000000e+00> : vector<8x8xf32>
    %81 = tpu.matmul %79, %80, %cst_24 {dimension_numbers = #tpu.dot_dimension_numbers<[1], [1], [0], [0], [0, 0, 1, 0], [], []>} : vector<8x32xbf16>, vector<8x32xbf16>, vector<8x8xf32> -> vector<8x8xf32>
    %82 = vector.broadcast %24 : vector<1x8xf32> to vector<8x8xf32>
    %83 = arith.addf %81, %82 : vector<8x8xf32>
    %cst_25 = arith.constant dense<0xFF800000> : vector<8xf32>
    %84 = vector.multi_reduction <maximumf>, %83, %cst_25 [1] : vector<8x8xf32> to vector<8xf32>
    %85 = vector.shape_cast %84 : vector<8xf32> to vector<8x1xf32>
    %86 = vector.broadcast %85 : vector<8x1xf32> to vector<8x8xf32>
    %87 = arith.subf %83, %86 : vector<8x8xf32>
    %88 = math.exp %87 : vector<8x8xf32>
    %cst_26 = arith.constant dense<0.000000e+00> : vector<8xf32>
    %89 = vector.multi_reduction <add>, %88, %cst_26 [1] : vector<8x8xf32> to vector<8xf32>
    %90 = vector.shape_cast %89 : vector<8xf32> to vector<8x1xf32>
    %91 = tpu.reciprocal %90 {approx = true} : vector<8x1xf32> -> vector<8x1xf32>
    %92 = vector.broadcast %91 : vector<8x1xf32> to vector<8x8xf32>
    %93 = arith.mulf %88, %92 : vector<8x8xf32>
    %94 = arith.truncf %93 : vector<8x8xf32> to vector<8x8xbf16>
    %95 = vector.extract_strided_slice %22 {offsets = [0, 96], sizes = [8, 32], strides = [1, 1]} : vector<8x128xbf16> to vector<8x32xbf16>
    %cst_27 = arith.constant dense<0.000000e+00> : vector<8x32xf32>
    %96 = tpu.matmul %94, %95, %cst_27 {dimension_numbers = #tpu.dot_dimension_numbers<[1], [0], [0], [1], [0, 0, 1, 1], [], []>} : vector<8x8xbf16>, vector<8x32xbf16>, vector<8x32xf32> -> vector<8x32xf32>
    %97 = tpu.concatenate %42, %60, %78, %96 in 1 : vector<8x32xf32>, vector<8x32xf32>, vector<8x32xf32>, vector<8x32xf32> -> vector<8x128xf32>
    %98 = vector.extract_strided_slice %12 {offsets = [8, 0], sizes = [8, 128], strides = [1, 1]} : vector<16x128xf32> to vector<8x128xf32>
    %cst_28 = arith.constant 0.176776692 : f32
    %99 = vector.broadcast %cst_28 : f32 to vector<8x128xf32>
    %100 = arith.mulf %98, %99 : vector<8x128xf32>
    %101 = arith.truncf %100 : vector<8x128xf32> to vector<8x128xbf16>
    %102 = vector.extract_strided_slice %13 {offsets = [8, 0], sizes = [8, 128], strides = [1, 1]} : vector<16x128xf32> to vector<8x128xf32>
    %103 = arith.truncf %102 : vector<8x128xf32> to vector<8x128xbf16>
    %104 = vector.extract_strided_slice %14 {offsets = [8, 0], sizes = [8, 128], strides = [1, 1]} : vector<16x128xf32> to vector<8x128xf32>
    %105 = arith.truncf %104 : vector<8x128xf32> to vector<8x128xbf16>
    %c1 = arith.constant 1 : index
    %c0_29 = arith.constant 0 : index
    %c0_30 = arith.constant 0 : index
    %106 = vector.load %arg2[%c1, %c0_29, %c0_30] : memref<2x1x8xf32, #tpu.memory_space<vmem>>, vector<1x1x8xf32>
    %107 = vector.shape_cast %106 : vector<1x1x8xf32> to vector<1x8xf32>
    %108 = vector.extract_strided_slice %101 {offsets = [0, 0], sizes = [8, 32], strides = [1, 1]} : vector<8x128xbf16> to vector<8x32xbf16>
    %109 = vector.extract_strided_slice %103 {offsets = [0, 0], sizes = [8, 32], strides = [1, 1]} : vector<8x128xbf16> to vector<8x32xbf16>
    %cst_31 = arith.constant dense<0.000000e+00> : vector<8x8xf32>
    %110 = tpu.matmul %108, %109, %cst_31 {dimension_numbers = #tpu.dot_dimension_numbers<[1], [1], [0], [0], [0, 0, 1, 0], [], []>} : vector<8x32xbf16>, vector<8x32xbf16>, vector<8x8xf32> -> vector<8x8xf32>
    %111 = vector.broadcast %107 : vector<1x8xf32> to vector<8x8xf32>
    %112 = arith.addf %110, %111 : vector<8x8xf32>
    %cst_32 = arith.constant dense<0xFF800000> : vector<8xf32>
    %113 = vector.multi_reduction <maximumf>, %112, %cst_32 [1] : vector<8x8xf32> to vector<8xf32>
    %114 = vector.shape_cast %113 : vector<8xf32> to vector<8x1xf32>
    %115 = vector.broadcast %114 : vector<8x1xf32> to vector<8x8xf32>
    %116 = arith.subf %112, %115 : vector<8x8xf32>
    %117 = math.exp %116 : vector<8x8xf32>
    %cst_33 = arith.constant dense<0.000000e+00> : vector<8xf32>
    %118 = vector.multi_reduction <add>, %117, %cst_33 [1] : vector<8x8xf32> to vector<8xf32>
    %119 = vector.shape_cast %118 : vector<8xf32> to vector<8x1xf32>
    %120 = tpu.reciprocal %119 {approx = true} : vector<8x1xf32> -> vector<8x1xf32>
    %121 = vector.broadcast %120 : vector<8x1xf32> to vector<8x8xf32>
    %122 = arith.mulf %117, %121 : vector<8x8xf32>
    %123 = arith.truncf %122 : vector<8x8xf32> to vector<8x8xbf16>
    %124 = vector.extract_strided_slice %105 {offsets = [0, 0], sizes = [8, 32], strides = [1, 1]} : vector<8x128xbf16> to vector<8x32xbf16>
    %cst_34 = arith.constant dense<0.000000e+00> : vector<8x32xf32>
    %125 = tpu.matmul %123, %124, %cst_34 {dimension_numbers = #tpu.dot_dimension_numbers<[1], [0], [0], [1], [0, 0, 1, 1], [], []>} : vector<8x8xbf16>, vector<8x32xbf16>, vector<8x32xf32> -> vector<8x32xf32>
    %126 = vector.extract_strided_slice %101 {offsets = [0, 32], sizes = [8, 32], strides = [1, 1]} : vector<8x128xbf16> to vector<8x32xbf16>
    %127 = vector.extract_strided_slice %103 {offsets = [0, 32], sizes = [8, 32], strides = [1, 1]} : vector<8x128xbf16> to vector<8x32xbf16>
    %cst_35 = arith.constant dense<0.000000e+00> : vector<8x8xf32>
    %128 = tpu.matmul %126, %127, %cst_35 {dimension_numbers = #tpu.dot_dimension_numbers<[1], [1], [0], [0], [0, 0, 1, 0], [], []>} : vector<8x32xbf16>, vector<8x32xbf16>, vector<8x8xf32> -> vector<8x8xf32>
    %129 = vector.broadcast %107 : vector<1x8xf32> to vector<8x8xf32>
    %130 = arith.addf %128, %129 : vector<8x8xf32>
    %cst_36 = arith.constant dense<0xFF800000> : vector<8xf32>
    %131 = vector.multi_reduction <maximumf>, %130, %cst_36 [1] : vector<8x8xf32> to vector<8xf32>
    %132 = vector.shape_cast %131 : vector<8xf32> to vector<8x1xf32>
    %133 = vector.broadcast %132 : vector<8x1xf32> to vector<8x8xf32>
    %134 = arith.subf %130, %133 : vector<8x8xf32>
    %135 = math.exp %134 : vector<8x8xf32>
    %cst_37 = arith.constant dense<0.000000e+00> : vector<8xf32>
    %136 = vector.multi_reduction <add>, %135, %cst_37 [1] : vector<8x8xf32> to vector<8xf32>
    %137 = vector.shape_cast %136 : vector<8xf32> to vector<8x1xf32>
    %138 = tpu.reciprocal %137 {approx = true} : vector<8x1xf32> -> vector<8x1xf32>
    %139 = vector.broadcast %138 : vector<8x1xf32> to vector<8x8xf32>
    %140 = arith.mulf %135, %139 : vector<8x8xf32>
    %141 = arith.truncf %140 : vector<8x8xf32> to vector<8x8xbf16>
    %142 = vector.extract_strided_slice %105 {offsets = [0, 32], sizes = [8, 32], strides = [1, 1]} : vector<8x128xbf16> to vector<8x32xbf16>
    %cst_38 = arith.constant dense<0.000000e+00> : vector<8x32xf32>
    %143 = tpu.matmul %141, %142, %cst_38 {dimension_numbers = #tpu.dot_dimension_numbers<[1], [0], [0], [1], [0, 0, 1, 1], [], []>} : vector<8x8xbf16>, vector<8x32xbf16>, vector<8x32xf32> -> vector<8x32xf32>
    %144 = vector.extract_strided_slice %101 {offsets = [0, 64], sizes = [8, 32], strides = [1, 1]} : vector<8x128xbf16> to vector<8x32xbf16>
    %145 = vector.extract_strided_slice %103 {offsets = [0, 64], sizes = [8, 32], strides = [1, 1]} : vector<8x128xbf16> to vector<8x32xbf16>
    %cst_39 = arith.constant dense<0.000000e+00> : vector<8x8xf32>
    %146 = tpu.matmul %144, %145, %cst_39 {dimension_numbers = #tpu.dot_dimension_numbers<[1], [1], [0], [0], [0, 0, 1, 0], [], []>} : vector<8x32xbf16>, vector<8x32xbf16>, vector<8x8xf32> -> vector<8x8xf32>
    %147 = vector.broadcast %107 : vector<1x8xf32> to vector<8x8xf32>
    %148 = arith.addf %146, %147 : vector<8x8xf32>
    %cst_40 = arith.constant dense<0xFF800000> : vector<8xf32>
    %149 = vector.multi_reduction <maximumf>, %148, %cst_40 [1] : vector<8x8xf32> to vector<8xf32>
    %150 = vector.shape_cast %149 : vector<8xf32> to vector<8x1xf32>
    %151 = vector.broadcast %150 : vector<8x1xf32> to vector<8x8xf32>
    %152 = arith.subf %148, %151 : vector<8x8xf32>
    %153 = math.exp %152 : vector<8x8xf32>
    %cst_41 = arith.constant dense<0.000000e+00> : vector<8xf32>
    %154 = vector.multi_reduction <add>, %153, %cst_41 [1] : vector<8x8xf32> to vector<8xf32>
    %155 = vector.shape_cast %154 : vector<8xf32> to vector<8x1xf32>
    %156 = tpu.reciprocal %155 {approx = true} : vector<8x1xf32> -> vector<8x1xf32>
    %157 = vector.broadcast %156 : vector<8x1xf32> to vector<8x8xf32>
    %158 = arith.mulf %153, %157 : vector<8x8xf32>
    %159 = arith.truncf %158 : vector<8x8xf32> to vector<8x8xbf16>
    %160 = vector.extract_strided_slice %105 {offsets = [0, 64], sizes = [8, 32], strides = [1, 1]} : vector<8x128xbf16> to vector<8x32xbf16>
    %cst_42 = arith.constant dense<0.000000e+00> : vector<8x32xf32>
    %161 = tpu.matmul %159, %160, %cst_42 {dimension_numbers = #tpu.dot_dimension_numbers<[1], [0], [0], [1], [0, 0, 1, 1], [], []>} : vector<8x8xbf16>, vector<8x32xbf16>, vector<8x32xf32> -> vector<8x32xf32>
    %162 = vector.extract_strided_slice %101 {offsets = [0, 96], sizes = [8, 32], strides = [1, 1]} : vector<8x128xbf16> to vector<8x32xbf16>
    %163 = vector.extract_strided_slice %103 {offsets = [0, 96], sizes = [8, 32], strides = [1, 1]} : vector<8x128xbf16> to vector<8x32xbf16>
    %cst_43 = arith.constant dense<0.000000e+00> : vector<8x8xf32>
    %164 = tpu.matmul %162, %163, %cst_43 {dimension_numbers = #tpu.dot_dimension_numbers<[1], [1], [0], [0], [0, 0, 1, 0], [], []>} : vector<8x32xbf16>, vector<8x32xbf16>, vector<8x8xf32> -> vector<8x8xf32>
    %165 = vector.broadcast %107 : vector<1x8xf32> to vector<8x8xf32>
    %166 = arith.addf %164, %165 : vector<8x8xf32>
    %cst_44 = arith.constant dense<0xFF800000> : vector<8xf32>
    %167 = vector.multi_reduction <maximumf>, %166, %cst_44 [1] : vector<8x8xf32> to vector<8xf32>
    %168 = vector.shape_cast %167 : vector<8xf32> to vector<8x1xf32>
    %169 = vector.broadcast %168 : vector<8x1xf32> to vector<8x8xf32>
    %170 = arith.subf %166, %169 : vector<8x8xf32>
    %171 = math.exp %170 : vector<8x8xf32>
    %cst_45 = arith.constant dense<0.000000e+00> : vector<8xf32>
    %172 = vector.multi_reduction <add>, %171, %cst_45 [1] : vector<8x8xf32> to vector<8xf32>
    %173 = vector.shape_cast %172 : vector<8xf32> to vector<8x1xf32>
    %174 = tpu.reciprocal %173 {approx = true} : vector<8x1xf32> -> vector<8x1xf32>
    %175 = vector.broadcast %174 : vector<8x1xf32> to vector<8x8xf32>
    %176 = arith.mulf %171, %175 : vector<8x8xf32>
    %177 = arith.truncf %176 : vector<8x8xf32> to vector<8x8xbf16>
    %178 = vector.extract_strided_slice %105 {offsets = [0, 96], sizes = [8, 32], strides = [1, 1]} : vector<8x128xbf16> to vector<8x32xbf16>
    %cst_46 = arith.constant dense<0.000000e+00> : vector<8x32xf32>
    %179 = tpu.matmul %177, %178, %cst_46 {dimension_numbers = #tpu.dot_dimension_numbers<[1], [0], [0], [1], [0, 0, 1, 1], [], []>} : vector<8x8xbf16>, vector<8x32xbf16>, vector<8x32xf32> -> vector<8x32xf32>
    %180 = tpu.concatenate %125, %143, %161, %179 in 1 : vector<8x32xf32>, vector<8x32xf32>, vector<8x32xf32>, vector<8x32xf32> -> vector<8x128xf32>
    %181 = tpu.concatenate %97, %180 in 0 : vector<8x128xf32>, vector<8x128xf32> -> vector<16x128xf32>
    %182 = arith.truncf %181 : vector<16x128xf32> to vector<16x128xbf16>
    %c0_47 = arith.constant 0 : index
    %c0_48 = arith.constant 0 : index
    %c0_49 = arith.constant 0 : index
    %183 = vector.load %arg7[%c0_47, %c0_48, %c0_49] : memref<1x128x128xbf16, #tpu.memory_space<vmem>>, vector<1x128x128xbf16>
    %184 = vector.shape_cast %183 : vector<1x128x128xbf16> to vector<128x128xbf16>
    %cst_50 = arith.constant dense<0.000000e+00> : vector<16x128xf32>
    %185 = tpu.matmul %182, %184, %cst_50 {dimension_numbers = #tpu.dot_dimension_numbers<[1], [0], [0], [1], [0, 0, 1, 1], [], []>} : vector<16x128xbf16>, vector<128x128xbf16>, vector<16x128xf32> -> vector<16x128xf32>
    %c0_51 = arith.constant 0 : index
    %c0_52 = arith.constant 0 : index
    %c0_53 = arith.constant 0 : index
    %186 = vector.load %arg8[%c0_51, %c0_52, %c0_53] : memref<1x1x128xf32, #tpu.memory_space<vmem>>, vector<1x1x128xf32>
    %187 = vector.shape_cast %186 : vector<1x1x128xf32> to vector<1x128xf32>
    %188 = vector.broadcast %187 : vector<1x128xf32> to vector<16x128xf32>
    %189 = arith.addf %185, %188 : vector<16x128xf32>
    %190 = arith.addf %3, %189 : vector<16x128xf32>
    %c0_54 = arith.constant 0 : index
    %c0_55 = arith.constant 0 : index
    %c0_56 = arith.constant 0 : index
    %191 = vector.load %arg9[%c0_54, %c0_55, %c0_56] : memref<1x1x128xf32, #tpu.memory_space<vmem>>, vector<1x1x128xf32>
    %192 = vector.shape_cast %191 : vector<1x1x128xf32> to vector<1x128xf32>
    %c0_57 = arith.constant 0 : index
    %c0_58 = arith.constant 0 : index
    %c0_59 = arith.constant 0 : index
    %193 = vector.load %arg10[%c0_57, %c0_58, %c0_59] : memref<1x1x128xf32, #tpu.memory_space<vmem>>, vector<1x1x128xf32>
    %194 = vector.shape_cast %193 : vector<1x1x128xf32> to vector<1x128xf32>
    %cst_60 = arith.constant dense<0.000000e+00> : vector<16xf32>
    %195 = vector.multi_reduction <add>, %190, %cst_60 [1] : vector<16x128xf32> to vector<16xf32>
    %196 = vector.shape_cast %195 : vector<16xf32> to vector<16x1xf32>
    %cst_61 = arith.constant 1.280000e+02 : f32
    %197 = vector.broadcast %cst_61 : f32 to vector<16x1xf32>
    %198 = arith.divf %196, %197 : vector<16x1xf32>
    %199 = vector.broadcast %198 : vector<16x1xf32> to vector<16x128xf32>
    %200 = arith.subf %190, %199 : vector<16x128xf32>
    %201 = arith.mulf %200, %200 : vector<16x128xf32>
    %cst_62 = arith.constant dense<0.000000e+00> : vector<16xf32>
    %202 = vector.multi_reduction <add>, %201, %cst_62 [1] : vector<16x128xf32> to vector<16xf32>
    %203 = vector.shape_cast %202 : vector<16xf32> to vector<16x1xf32>
    %cst_63 = arith.constant 1.280000e+02 : f32
    %204 = vector.broadcast %cst_63 : f32 to vector<16x1xf32>
    %205 = arith.divf %203, %204 : vector<16x1xf32>
    %206 = vector.broadcast %198 : vector<16x1xf32> to vector<16x128xf32>
    %207 = arith.subf %190, %206 : vector<16x128xf32>
    %cst_64 = arith.constant 9.99999996E-13 : f32
    %208 = vector.broadcast %cst_64 : f32 to vector<16x1xf32>
    %209 = arith.addf %205, %208 : vector<16x1xf32>
    %210 = math.rsqrt %209 : vector<16x1xf32>
    %211 = vector.broadcast %210 : vector<16x1xf32> to vector<16x128xf32>
    %212 = arith.mulf %207, %211 : vector<16x128xf32>
    %213 = vector.broadcast %192 : vector<1x128xf32> to vector<16x128xf32>
    %214 = arith.mulf %212, %213 : vector<16x128xf32>
    %215 = vector.broadcast %194 : vector<1x128xf32> to vector<16x128xf32>
    %216 = arith.addf %214, %215 : vector<16x128xf32>
    %217 = arith.truncf %216 : vector<16x128xf32> to vector<16x128xbf16>
    %c0_65 = arith.constant 0 : index
    %c0_66 = arith.constant 0 : index
    %c0_67 = arith.constant 0 : index
    %218 = vector.load %arg11[%c0_65, %c0_66, %c0_67] : memref<1x128x256xbf16, #tpu.memory_space<vmem>>, vector<1x128x256xbf16>
    %219 = vector.shape_cast %218 : vector<1x128x256xbf16> to vector<128x256xbf16>
    %cst_68 = arith.constant dense<0.000000e+00> : vector<16x256xf32>
    %220 = tpu.matmul %217, %219, %cst_68 {dimension_numbers = #tpu.dot_dimension_numbers<[1], [0], [0], [1], [0, 0, 1, 1], [], []>} : vector<16x128xbf16>, vector<128x256xbf16>, vector<16x256xf32> -> vector<16x256xf32>
    %c0_69 = arith.constant 0 : index
    %c0_70 = arith.constant 0 : index
    %c0_71 = arith.constant 0 : index
    %221 = vector.load %arg12[%c0_69, %c0_70, %c0_71] : memref<1x1x256xf32, #tpu.memory_space<vmem>>, vector<1x1x256xf32>
    %222 = vector.shape_cast %221 : vector<1x1x256xf32> to vector<1x256xf32>
    %223 = vector.broadcast %222 : vector<1x256xf32> to vector<16x256xf32>
    %224 = arith.addf %220, %223 : vector<16x256xf32>
    %225 = arith.mulf %224, %224 : vector<16x256xf32>
    %226 = arith.mulf %224, %225 : vector<16x256xf32>
    %cst_72 = arith.constant 4.471500e-02 : f32
    %227 = vector.broadcast %cst_72 : f32 to vector<16x256xf32>
    %228 = arith.mulf %227, %226 : vector<16x256xf32>
    %229 = arith.addf %224, %228 : vector<16x256xf32>
    %cst_73 = arith.constant 0.797884583 : f32
    %230 = vector.broadcast %cst_73 : f32 to vector<16x256xf32>
    %231 = arith.mulf %230, %229 : vector<16x256xf32>
    %232 = math.tanh %231 : vector<16x256xf32>
    %cst_74 = arith.constant 1.000000e+00 : f32
    %233 = vector.broadcast %cst_74 : f32 to vector<16x256xf32>
    %234 = arith.addf %233, %232 : vector<16x256xf32>
    %cst_75 = arith.constant 5.000000e-01 : f32
    %235 = vector.broadcast %cst_75 : f32 to vector<16x256xf32>
    %236 = arith.mulf %235, %234 : vector<16x256xf32>
    %237 = arith.mulf %224, %236 : vector<16x256xf32>
    %238 = arith.truncf %237 : vector<16x256xf32> to vector<16x256xbf16>
    %c0_76 = arith.constant 0 : index
    %c0_77 = arith.constant 0 : index
    %c0_78 = arith.constant 0 : index
    %239 = vector.load %arg13[%c0_76, %c0_77, %c0_78] : memref<1x256x128xbf16, #tpu.memory_space<vmem>>, vector<1x256x128xbf16>
    %240 = vector.shape_cast %239 : vector<1x256x128xbf16> to vector<256x128xbf16>
    %cst_79 = arith.constant dense<0.000000e+00> : vector<16x128xf32>
    %241 = tpu.matmul %238, %240, %cst_79 {dimension_numbers = #tpu.dot_dimension_numbers<[1], [0], [0], [1], [0, 0, 1, 1], [], []>} : vector<16x256xbf16>, vector<256x128xbf16>, vector<16x128xf32> -> vector<16x128xf32>
    %c0_80 = arith.constant 0 : index
    %c0_81 = arith.constant 0 : index
    %c0_82 = arith.constant 0 : index
    %242 = vector.load %arg14[%c0_80, %c0_81, %c0_82] : memref<1x1x128xf32, #tpu.memory_space<vmem>>, vector<1x1x128xf32>
    %243 = vector.shape_cast %242 : vector<1x1x128xf32> to vector<1x128xf32>
    %244 = vector.broadcast %243 : vector<1x128xf32> to vector<16x128xf32>
    %245 = arith.addf %241, %244 : vector<16x128xf32>
    %246 = arith.addf %216, %245 : vector<16x128xf32>
    %c0_83 = arith.constant 0 : index
    %c0_84 = arith.constant 0 : index
    %c0_85 = arith.constant 0 : index
    %247 = vector.load %arg15[%c0_83, %c0_84, %c0_85] : memref<1x1x128xf32, #tpu.memory_space<vmem>>, vector<1x1x128xf32>
    %248 = vector.shape_cast %247 : vector<1x1x128xf32> to vector<1x128xf32>
    %c0_86 = arith.constant 0 : index
    %c0_87 = arith.constant 0 : index
    %c0_88 = arith.constant 0 : index
    %249 = vector.load %arg16[%c0_86, %c0_87, %c0_88] : memref<1x1x128xf32, #tpu.memory_space<vmem>>, vector<1x1x128xf32>
    %250 = vector.shape_cast %249 : vector<1x1x128xf32> to vector<1x128xf32>
    %cst_89 = arith.constant dense<0.000000e+00> : vector<16xf32>
    %251 = vector.multi_reduction <add>, %246, %cst_89 [1] : vector<16x128xf32> to vector<16xf32>
    %252 = vector.shape_cast %251 : vector<16xf32> to vector<16x1xf32>
    %cst_90 = arith.constant 1.280000e+02 : f32
    %253 = vector.broadcast %cst_90 : f32 to vector<16x1xf32>
    %254 = arith.divf %252, %253 : vector<16x1xf32>
    %255 = vector.broadcast %254 : vector<16x1xf32> to vector<16x128xf32>
    %256 = arith.subf %246, %255 : vector<16x128xf32>
    %257 = arith.mulf %256, %256 : vector<16x128xf32>
    %cst_91 = arith.constant dense<0.000000e+00> : vector<16xf32>
    %258 = vector.multi_reduction <add>, %257, %cst_91 [1] : vector<16x128xf32> to vector<16xf32>
    %259 = vector.shape_cast %258 : vector<16xf32> to vector<16x1xf32>
    %cst_92 = arith.constant 1.280000e+02 : f32
    %260 = vector.broadcast %cst_92 : f32 to vector<16x1xf32>
    %261 = arith.divf %259, %260 : vector<16x1xf32>
    %262 = vector.broadcast %254 : vector<16x1xf32> to vector<16x128xf32>
    %263 = arith.subf %246, %262 : vector<16x128xf32>
    %cst_93 = arith.constant 9.99999996E-13 : f32
    %264 = vector.broadcast %cst_93 : f32 to vector<16x1xf32>
    %265 = arith.addf %261, %264 : vector<16x1xf32>
    %266 = math.rsqrt %265 : vector<16x1xf32>
    %267 = vector.broadcast %266 : vector<16x1xf32> to vector<16x128xf32>
    %268 = arith.mulf %263, %267 : vector<16x128xf32>
    %269 = vector.broadcast %248 : vector<1x128xf32> to vector<16x128xf32>
    %270 = arith.mulf %268, %269 : vector<16x128xf32>
    %271 = vector.broadcast %250 : vector<1x128xf32> to vector<16x128xf32>
    %272 = arith.addf %270, %271 : vector<16x128xf32>
    %c0_94 = arith.constant 0 : index
    %c0_95 = arith.constant 0 : index
    %273 = vector.load %arg23[%c0_94, %c0_95] : memref<16x128xf32, #tpu.memory_space<vmem>>, vector<16x128xf32>
    tpu.vector_store %arg23[%c0_94, %c0_95], %272 {strides = array<i32>} : memref<16x128xf32, #tpu.memory_space<vmem>>, vector<16x128xf32>,
    %c1_i32 = arith.constant 1 : i32
    %274 = arith.cmpi eq, %arg0, %c1_i32 : i32
    %275 = arith.extui %274 : i1 to i32
    %c0_i32_96 = arith.constant 0 : i32
    %276 = arith.cmpi ne, %275, %c0_i32_96 : i32
    scf.if %276 {
      %277 = vector.extract_strided_slice %272 {offsets = [0, 0], sizes = [1, 128], strides = [1, 1]} : vector<16x128xf32> to vector<1x128xf32>
      %278 = vector.extract_strided_slice %272 {offsets = [8, 0], sizes = [1, 128], strides = [1, 1]} : vector<16x128xf32> to vector<1x128xf32>
      %279 = tpu.concatenate %277, %278 in 0 : vector<1x128xf32>, vector<1x128xf32> -> vector<2x128xf32>
      %280 = arith.truncf %279 : vector<2x128xf32> to vector<2x128xbf16>
      %c0_97 = arith.constant 0 : index
      %c0_98 = arith.constant 0 : index
      %281 = vector.load %arg17[%c0_97, %c0_98] : memref<128x128xbf16, #tpu.memory_space<vmem>>, vector<128x128xbf16>
      %cst_99 = arith.constant dense<0.000000e+00> : vector<2x128xf32>
      %282 = tpu.matmul %280, %281, %cst_99 {dimension_numbers = #tpu.dot_dimension_numbers<[1], [0], [0], [1], [0, 0, 1, 1], [], []>} : vector<2x128xbf16>, vector<128x128xbf16>, vector<2x128xf32> -> vector<2x128xf32>
      %c0_100 = arith.constant 0 : index
      %c0_101 = arith.constant 0 : index
      %283 = vector.load %arg18[%c0_100, %c0_101] : memref<1x128xf32, #tpu.memory_space<vmem>>, vector<1x128xf32>
      %284 = vector.broadcast %283 : vector<1x128xf32> to vector<2x128xf32>
      %285 = arith.addf %282, %284 : vector<2x128xf32>
      %286 = math.tanh %285 : vector<2x128xf32>
      %c0_102 = arith.constant 0 : index
      %c0_103 = arith.constant 0 : index
      %287 = vector.load %arg21[%c0_102, %c0_103] : memref<2x128xf32, #tpu.memory_space<vmem>>, vector<2x128xf32>
      tpu.vector_store %arg21[%c0_102, %c0_103], %286 {strides = array<i32>} : memref<2x128xf32, #tpu.memory_space<vmem>>, vector<2x128xf32>,
      %288 = arith.truncf %286 : vector<2x128xf32> to vector<2x128xbf16>
      %c0_104 = arith.constant 0 : index
      %c0_105 = arith.constant 0 : index
      %289 = vector.load %arg19[%c0_104, %c0_105] : memref<128x1xbf16, #tpu.memory_space<vmem>>, vector<128x1xbf16>
      %cst_106 = arith.constant dense<0.000000e+00> : vector<2x1xf32>
      %290 = tpu.matmul %288, %289, %cst_106 {dimension_numbers = #tpu.dot_dimension_numbers<[1], [0], [0], [1], [0, 0, 1, 1], [], []>} : vector<2x128xbf16>, vector<128x1xbf16>, vector<2x1xf32> -> vector<2x1xf32>
      %c0_107 = arith.constant 0 : index
      %c0_108 = arith.constant 0 : index
      %291 = vector.load %arg20[%c0_107, %c0_108] : memref<1x1xf32, #tpu.memory_space<vmem>>, vector<1x1xf32>
      %292 = vector.broadcast %291 : vector<1x1xf32> to vector<2x1xf32>
      %293 = arith.addf %290, %292 : vector<2x1xf32>
      %294 = math.tanh %293 : vector<2x1xf32>
      %c0_109 = arith.constant 0 : index
      %c0_110 = arith.constant 0 : index
      %295 = vector.load %arg22[%c0_109, %c0_110] : memref<2x1xf32, #tpu.memory_space<vmem>>, vector<2x1xf32>
      tpu.vector_store %arg22[%c0_109, %c0_110], %294 {strides = array<i32>} : memref<2x1xf32, #tpu.memory_space<vmem>>, vector<2x1xf32>,
    } else {
    }
    return
  }
  func.func @transform_0(%arg0: i32) -> (i32, i32, i32) {
    %c0_i32 = arith.constant 0 : i32
    %c0_i32_0 = arith.constant 0 : i32
    %c0_i32_1 = arith.constant 0 : i32
    %c0_i32_2 = arith.constant 0 : i32
    return %c0_i32, %c0_i32_0, %c0_i32_1 : i32, i32, i32
  }
  func.func @transform_1(%arg0: i32) -> (i32, i32, i32) {
    %c0_i32 = arith.constant 0 : i32
    %c0_i32_0 = arith.constant 0 : i32
    %c0_i32_1 = arith.constant 0 : i32
    %c0_i32_2 = arith.constant 0 : i32
    return %c0_i32, %c0_i32_0, %c0_i32_1 : i32, i32, i32
  }
  func.func @transform_2(%arg0: i32) -> (i32, i32) {
    %c0_i32 = arith.constant 0 : i32
    %c0_i32_0 = arith.constant 0 : i32
    %c0_i32_1 = arith.constant 0 : i32
    return %c0_i32, %c0_i32_0 : i32, i32
  }
  func.func @transform_3(%arg0: i32) -> (i32, i32) {
    %c0_i32 = arith.constant 0 : i32
    %c0_i32_0 = arith.constant 0 : i32
    %c0_i32_1 = arith.constant 0 : i32
    return %c0_i32, %c0_i32_0 : i32, i32
  }
  func.func @transform_4(%arg0: i32) -> (i32, i32, i32) {
    %c0_i32 = arith.constant 0 : i32
    %c0_i32_0 = arith.constant 0 : i32
    %c0_i32_1 = arith.constant 0 : i32
    return %arg0, %c0_i32, %c0_i32_0 : i32, i32, i32
  }
  func.func @transform_5(%arg0: i32) -> (i32, i32, i32) {
    %c0_i32 = arith.constant 0 : i32
    %c0_i32_0 = arith.constant 0 : i32
    %c0_i32_1 = arith.constant 0 : i32
    return %arg0, %c0_i32, %c0_i32_0 : i32, i32, i32
  }
  func.func @transform_6(%arg0: i32) -> (i32, i32, i32) {
    %c0_i32 = arith.constant 0 : i32
    %c0_i32_0 = arith.constant 0 : i32
    %c0_i32_1 = arith.constant 0 : i32
    return %arg0, %c0_i32, %c0_i32_0 : i32, i32, i32
  }
  func.func @transform_7(%arg0: i32) -> (i32, i32, i32) {
    %c0_i32 = arith.constant 0 : i32
    %c0_i32_0 = arith.constant 0 : i32
    %c0_i32_1 = arith.constant 0 : i32
    return %arg0, %c0_i32, %c0_i32_0 : i32, i32, i32
  }
  func.func @transform_8(%arg0: i32) -> (i32, i32, i32) {
    %c0_i32 = arith.constant 0 : i32
    %c0_i32_0 = arith.constant 0 : i32
    %c0_i32_1 = arith.constant 0 : i32
    return %arg0, %c0_i32, %c0_i32_0 : i32, i32, i32
  }
  func.func @transform_9(%arg0: i32) -> (i32, i32, i32) {
    %c0_i32 = arith.constant 0 : i32
    %c0_i32_0 = arith.constant 0 : i32
    %c0_i32_1 = arith.constant 0 : i32
    return %arg0, %c0_i32, %c0_i32_0 : i32, i32, i32
  }
  func.func @transform_10(%arg0: i32) -> (i32, i32, i32) {
    %c0_i32 = arith.constant 0 : i32
    %c0_i32_0 = arith.constant 0 : i32
    %c0_i32_1 = arith.constant 0 : i32
    return %arg0, %c0_i32, %c0_i32_0 : i32, i32, i32
  }
  func.func @transform_11(%arg0: i32) -> (i32, i32, i32) {
    %c0_i32 = arith.constant 0 : i32
    %c0_i32_0 = arith.constant 0 : i32
    %c0_i32_1 = arith.constant 0 : i32
    return %arg0, %c0_i32, %c0_i32_0 : i32, i32, i32
  }
  func.func @transform_12(%arg0: i32) -> (i32, i32, i32) {
    %c0_i32 = arith.constant 0 : i32
    %c0_i32_0 = arith.constant 0 : i32
    %c0_i32_1 = arith.constant 0 : i32
    return %arg0, %c0_i32, %c0_i32_0 : i32, i32, i32
  }
  func.func @transform_13(%arg0: i32) -> (i32, i32, i32) {
    %c0_i32 = arith.constant 0 : i32
    %c0_i32_0 = arith.constant 0 : i32
    %c0_i32_1 = arith.constant 0 : i32
    return %arg0, %c0_i32, %c0_i32_0 : i32, i32, i32
  }
  func.func @transform_14(%arg0: i32) -> (i32, i32, i32) {
    %c0_i32 = arith.constant 0 : i32
    %c0_i32_0 = arith.constant 0 : i32
    %c0_i32_1 = arith.constant 0 : i32
    return %arg0, %c0_i32, %c0_i32_0 : i32, i32, i32
  }
  func.func @transform_15(%arg0: i32) -> (i32, i32, i32) {
    %c0_i32 = arith.constant 0 : i32
    %c0_i32_0 = arith.constant 0 : i32
    %c0_i32_1 = arith.constant 0 : i32
    return %arg0, %c0_i32, %c0_i32_0 : i32, i32, i32
  }
  func.func @transform_16(%arg0: i32) -> (i32, i32) {
    %c0_i32 = arith.constant 0 : i32
    %c0_i32_0 = arith.constant 0 : i32
    %c0_i32_1 = arith.constant 0 : i32
    return %c0_i32, %c0_i32_0 : i32, i32
  }
  func.func @transform_17(%arg0: i32) -> (i32, i32) {
    %c0_i32 = arith.constant 0 : i32
    %c0_i32_0 = arith.constant 0 : i32
    %c0_i32_1 = arith.constant 0 : i32
    return %c0_i32, %c0_i32_0 : i32, i32
  }
  func.func @transform_18(%arg0: i32) -> (i32, i32) {
    %c0_i32 = arith.constant 0 : i32
    %c0_i32_0 = arith.constant 0 : i32
    %c0_i32_1 = arith.constant 0 : i32
    return %c0_i32, %c0_i32_0 : i32, i32
  }
  func.func @transform_19(%arg0: i32) -> (i32, i32) {
    %c0_i32 = arith.constant 0 : i32
    %c0_i32_0 = arith.constant 0 : i32
    %c0_i32_1 = arith.constant 0 : i32
    return %c0_i32, %c0_i32_0 : i32, i32
  }
  func.func @transform_20(%arg0: i32) -> (i32, i32) {
    %c0_i32 = arith.constant 0 : i32
    %c0_i32_0 = arith.constant 0 : i32
    %c0_i32_1 = arith.constant 0 : i32
    return %c0_i32, %c0_i32_0 : i32, i32
  }
  func.func @transform_21(%arg0: i32) -> (i32, i32) {
    %c0_i32 = arith.constant 0 : i32
    %c0_i32_0 = arith.constant 0 : i32
    %c0_i32_1 = arith.constant 0 : i32
    return %c0_i32, %c0_i32_0 : i32, i32
  }
}

</mosaic_0001>

<bundles_post_ra>
// kernel: tpu_custom_call.1
= control target key start
LH: loop header
LB: loop body
LE: loop exit
PB: predicated region body
PF: predicated region fallthrough
CT: control target
= control target key end

     0   :  { %s4826_s0 = inlined_call_operand.vmem [shape: f32[2,8,128], index: 0, kind: input, shape index: {}]   ;;  %s4827_s1 = inlined_call_operand.vmem [shape: f32[2,1,8], index: 1, kind: input, shape index: {}]   ;;  %s4828_s2 = inlined_call_operand.vmem [shape: f32[1,128], index: 2, kind: input, shape index: {}]   ;;  %s4829_s3 = inlined_call_operand.vmem [shape: f32[1,128], index: 3, kind: input, shape index: {}]   ;;  %s4830_s4 = inlined_call_operand.hbm [shape: bf16[2,128,384], index: 4, kind: input, shape index: {}]   ;;  %s4831_s5 = inlined_call_operand.vmem [shape: f32[2,1,384], index: 5, kind: input, shape index: {}]   ;;  %s4832_s6 = inlined_call_operand.hbm [shape: bf16[2,128,128], index: 6, kind: input, shape index: {}]   ;;  %s4833_s7 = inlined_call_operand.vmem [shape: f32[2,1,128], index: 7, kind: input, shape index: {}]   ;;  %s4834_s8 = inlined_call_operand.vmem [shape: f32[2,1,128], index: 8, kind: input, shape index: {}]   ;;  %s4835_s9 = inlined_call_operand.vmem [shape: f32[2,1,128], index: 9, kind: input, shape index: {}]   ;;  %s4836_s10 = inlined_call_operand.hbm [shape: bf16[2,128,256], index: 10, kind: input, shape index: {}]   ;;  %s4837_s11 = inlined_call_operand.vmem [shape: f32[2,1,256], index: 11, kind: input, shape index: {}]   ;;  %s4838_s12 = inlined_call_operand.hbm [shape: bf16[2,256,128], index: 12, kind: input, shape index: {}]   ;;  %s4839_s13 = inlined_call_operand.vmem [shape: f32[2,1,128], index: 13, kind: input, shape index: {}]   ;;  %s4840_s14 = inlined_call_operand.vmem [shape: f32[2,1,128], index: 14, kind: input, shape index: {}]   ;;  %s4841_s15 = inlined_call_operand.vmem [shape: f32[2,1,128], index: 15, kind: input, shape index: {}]   ;;  %s4842_s16 = inlined_call_operand.vmem [shape: bf16[128,128], index: 16, kind: input, shape index: {}]   ;;  %s4843_s17 = inlined_call_operand.vmem [shape: f32[1,128], index: 17, kind: input, shape index: {}]   ;;  %s4844_s18 = inlined_call_operand.vmem [shape: bf16[128,1], index: 18, kind: input, shape index: {}]   ;;  %s4845_s19 = inlined_call_operand.<no memory space> [shape: f32[1,1], index: 19, kind: input, shape index: {}]   ;;  %s4846_s20 = inlined_call_operand.hbm [shape: f32[2,128], index: 20, kind: output, shape index: {0}]   ;;  %s4847_s21 = inlined_call_operand.vmem [shape: f32[2,1], index: 21, kind: output, shape index: {1}]  }
   0x1   :  { %4862 = sst [smem:[#allocation21_spill]] %s4826_s0  ;;  %v27_v0 = vstv %s4845_s19 }
   0x2   :  { %4863 = sst [smem:[#allocation22_spill]] %s4827_s1  ;;  %28 = vst [vmem:[#allocation3] sm:$0x1] %v27_v0 }
   0x3   :  { %4864 = sst [smem:[#allocation23_spill]] %s4828_s2 }
   0x4   :  { %4865 = sst [smem:[#allocation24_spill]] %s4829_s3 }
   0x5   :  { %4866 = sst [smem:[#allocation25_spill]] %s4830_s4 }
   0x6   :  { %4867 = sst [smem:[#allocation26_spill]] %s4831_s5 }
   0x7   :  { %4868 = sst [smem:[#allocation27_spill]] %s4832_s6 }
   0x8   :  { %4869 = sst [smem:[#allocation28_spill]] %s4836_s10 }
   0x9   :  { %4870 = sst [smem:[#allocation29_spill]] %s4838_s12 }
   0xa   :  { %4871 = sst [smem:[#allocation30_spill]] %s4842_s16 }
   0xb   :  { %4872 = sst [smem:[#allocation31_spill]] %s4843_s17 }
   0xc   :  { %4873 = sst [smem:[#allocation32_spill]] %s4844_s18 }
   0xd   :  { %4874 = sst [smem:[#allocation33_spill]] %s4846_s20 }
   0xe   :  { %4875 = sst [smem:[#allocation34_spill]] %s4847_s21 }
   0xf   :  { %29 = vsyncpa [#allocation5], 0 }
  0x10   :  { %31 = vsyncpa [#allocation5 + $0x1], 0 }
  0x11   :  { %32 = vsyncpa [#allocation8], 0 }
  0x12   :  { %34 = vsyncpa [#allocation8 + $0x1], 0 }
  0x13   :  { %35 = vsyncpa [#allocation11], 0 }
  0x14   :  { %37 = vsyncpa [#allocation11 + $0x1], 0 }
  0x15   :  { %38 = vsyncpa [#allocation6], 0  ;;  %s4129_s26 = smov 0   ;;  %s4131_s27 = smov 0  }
  0x16   :  { %s4133_s3 = smov 0   ;;  %s4135_s28 = smov 0  }
  0x17 LB: > { %4876 = sst [smem:[#allocation17_spill]] %s3987_s27  ;;  %s4148_s19 = sadd.s32 4294967295, %s3995_s28   ;;  %s3995_s28 = sphi %s4135_s28, %s4904_s28   ;;  %s3991_s3 = sphi %s4133_s3, %s4907_s3   ;;  %s3987_s27 = sphi %s4131_s27, %s4906_s27   ;;  %s3983_s26 = sphi %s4129_s26, %s4905_s26  }
  0x18   : > { %4877 = sst [smem:[#allocation18_spill]] %s3991_s3  ;;  %s4151_s29 = sadd.s32 1, %s3995_s28  }
  0x19   : > { %4878 = sst [smem:[#allocation19_spill]] %s4151_s29  ;;  %s132_s0 = ssub.s32 %s3995_s28, %s4151_s29 }
  0x1a   : > { %s135_s4 = sadd.s32 1, %s3991_s3  ;;  %p133_p0 = scmp.eq.s32.totalorder %s132_s0, 0 }
  0x1b   : > { %p142_p1 = scmp.ne.s32.totalorder %s3991_s3, %s3987_s27  ;;  %p143_p2 = scmp.eq.s32.totalorder %s3995_s28, 0 }
  0x1c   : > { %p148_p3 = scmp.ne.s32.totalorder %s3987_s27, %s3983_s26  ;;  %p149_p5 = scmp.eq.s32.totalorder %s4148_s19, 0 }
  0x1d   : > { %s4161_s30 = scalar_select %p133_p0, %s3991_s3, %s135_s4  }
  0x1e   : > { %p144_p4 = por %p143_p2, %p142_p1  ;;  %p3586_p6 = scmp.lt.s32.totalorder %s3995_s28, 2 }
  0x1f   : > { %4879 = sst [smem:[#allocation20_spill]] %s4161_s30  ;;  %p4165_p7 = por %p149_p5, %p148_p3 }
  0x20   : > { %s4170_s22 = sand.u32 1, %s3991_s3   ;;  %p4172_p8 = pnand %p3586_p6, %p144_p4 }
  0x21   : > { %s4880_s5 = scalar_select %p4165_p7, 1, 0 }
  0x22   : > { %s636_s1 = sand.u32 1, %s3995_s28   ;;  %s3159_s24 = sshll.u32 %s4170_s22, 6 }
  0x23   : > { %s3288_s2 = sshll.u32 %s3995_s28, 10  ;;  %s640_s25 = scalar_lea.vmem [#allocation7], %s3159_s24 }
  0x24   : > { %s647_s26 = sshll.u32 %s640_s25, 4  ;;  %s4882_s6 = sld [smem:[#allocation27_spill]]  ;;  %s4184_s26 = int_to_ptr.vmem [resolvable:$true] %s647_s26 }
  0x25   : > { %s4186_s3 = scalar_lea.sflag [#allocation8], %s636_s1  ;;  %p4192_p10 = pneg %p4172_p8 }
  0x2a   : > { %s4182_s30 = scalar_lea.hbm %s4882_s6, %s3288_s2  ;;  %s3808_s25 = scalar_lea.hbm %s4882_s6, 2048 }
  0x2b   : > { %s3803_s29 = scalar_lea.hbm %s4182_s30, 1024  ;;  %p3809_p13 = scmp.lt.u32.totalorder %s4182_s30, %s4882_s6 }
  0x2c   : > { %p3804_p9 = scmp.ne.s32.totalorder %s4182_s30, %s3803_s29  ;;  %p3810_p0 = scmp.lt.u32.totalorder %s3808_s25, %s3803_s29 }
  0x2d   : > { %p3812_p2 = scmp.lt.u32.totalorder %s3803_s29, %s4182_s30 }
  0x2e   : > { %p3806_p11 = pnand %p4192_p10, %p3804_p9  ;;  %p3811_p1 = por %p3810_p0, %p3809_p13 }
  0x30   : > { %p3807_p12 = pneg %p3806_p11  ;;  %p3813_p3 = por %p3812_p2, %p3811_p1 }
  0x32   : > { %p3814_p4 = pnand %p3813_p3, %p3807_p12 }
  0x34   : > { %3817 = shalt.err (!%p3814_p4)
}
  0x35   : > { %s3818_s1 = scalar_lea.vmem %s4184_s26, 1024  ;;  %s3997_s24 = smov [#allocation7]  }
  0x36   : > { %p3819_p5 = scmp.ne.s32.totalorder %s4184_s26, %s3818_s1  ;;  %s3823_s2 = sshll.u32 %s3997_s24, 4  ;;  %s3824_s2 = int_to_ptr.vmem [resolvable:$false] %s3823_s2 }
  0x37   : > { %s3825_s0 = scalar_lea.vmem %s3824_s2, 2048  ;;  %p3826_p11 = scmp.lt.s32.totalorder %s4184_s26, %s3824_s2 }
  0x38   : > { %p3821_p6 = pnand %p3819_p5, %p4192_p10  ;;  %p3827_p7 = scmp.lt.s32.totalorder %s3825_s0, %s3818_s1 }
  0x3a   : > { %p3822_p9 = pneg %p3821_p6  ;;  %p3828_p13 = por %p3827_p7, %p3826_p11 }
  0x3c   : > { %p3829_p0 = pnand %p3828_p13, %p3822_p9 }
  0x3e   : > { %3832 = shalt.err (!%p3829_p0)
}
  0x3f   : > { %s4857_s29 = smov 64   ;;  %s4858_s25 = smov 4  }
  0x40   : > { %3579 = dma.hbm_to_vmem [thread:$0]  (!%p4172_p8), %s4182_s30, 1024, %s4184_s26, %s4186_s3, %s4857_s29, %s4857_s29, %s4858_s25  }
  0x41   : > { %p3168_p7 = scmp.ge.s32.totalorder %s3995_s28, 1  ;;  %p740_p12 = scmp.lt.s32.totalorder %s3995_s28, 3 }
  0x42   : > { %s3557_s4 = smul.u32 192, %s4170_s22  ;;  %s4885_s6 = sld [smem:[#allocation25_spill]] }
  0x43   : > { %p4222_p1 = pnand %p3168_p7, %p740_p12  ;;  %s3558_s24 = smul.u32 3072, %s3995_s28 }
  0x44   : > { %s612_s17 = scalar_lea.vmem [#allocation4], %s3557_s4  ;;  %s609_s30 = scalar_lea.sflag [#allocation5], %s4170_s22 }
  0x45   : > { %s4884_s1 = scalar_select %p4222_p1, 1, 0 }
  0x46   : > { %s619_s18 = sshll.u32 %s612_s17, 4  ;;  %s4232_s18 = int_to_ptr.vmem [resolvable:$true] %s619_s18 }
  0x48   : > { %s4230_s21 = scalar_lea.hbm %s4885_s6, %s3558_s24  ;;  %s3838_s2 = scalar_lea.hbm %s4885_s6, 6144 }
  0x49   : > { %s3833_s26 = scalar_lea.hbm %s4230_s21, 3072  ;;  %p3839_p5 = scmp.lt.u32.totalorder %s4230_s21, %s4885_s6 }
  0x4a   : > { %p3834_p2 = scmp.ne.s32.totalorder %s4230_s21, %s3833_s26  ;;  %p3840_p6 = scmp.lt.u32.totalorder %s3838_s2, %s3833_s26 }
  0x4b   : > { %p3842_p11 = scmp.lt.u32.totalorder %s3833_s26, %s4230_s21 }
  0x4c   : > { %p3836_p3 = pnand %p3834_p2, %p4192_p10  ;;  %p3841_p9 = por %p3840_p6, %p3839_p5 }
  0x4e   : > { %p3837_p4 = pneg %p3836_p3  ;;  %p3843_p13 = por %p3842_p11, %p3841_p9 }
  0x50   : > { %p3844_p0 = pnand %p3843_p13, %p3837_p4 }
  0x52   : > { %3847 = shalt.err (!%p3844_p0)
}
  0x53   : > { %s3848_s17 = scalar_lea.vmem %s4232_s18, 3072  ;;  %s4000_s29 = smov [#allocation4]  }
  0x54   : > { %p3849_p7 = scmp.ne.s32.totalorder %s4232_s18, %s3848_s17  ;;  %s3853_s25 = sshll.u32 %s4000_s29, 4  ;;  %s3854_s25 = int_to_ptr.vmem [resolvable:$false] %s3853_s25 }
  0x55   : > { %s3855_s4 = scalar_lea.vmem %s3854_s25, 6144  ;;  %p3856_p3 = scmp.lt.s32.totalorder %s4232_s18, %s3854_s25 }
  0x56   : > { %p3851_p12 = pnand %p3849_p7, %p4192_p10  ;;  %p3857_p1 = scmp.lt.s32.totalorder %s3855_s4, %s3848_s17 }
  0x58   : > { %p3852_p2 = pneg %p3851_p12  ;;  %p3858_p5 = por %p3857_p1, %p3856_p3 }
  0x5a   : > { %p3859_p6 = pnand %p3858_p5, %p3852_p2 }
  0x5c   : > { %3862 = shalt.err (!%p3859_p6)
}
  0x5d   : > { %s4001_s26 = smov 192   ;;  %s4002_s2 = smov 12  }
  0x5e   : > { %3576 = dma.hbm_to_vmem [thread:$0]  (!%p4172_p8), %s4230_s21, 3072, %s4232_s18, %s609_s30, %s4001_s26, %s4001_s26, %s4002_s2  }
  0x5f   : > { %s3162_s24 = sshll.u32 %s4170_s22, 7  ;;  %s3289_s0 = sshll.u32 %s3995_s28, 11 }
  0x60   : > { %s4886_s10 = sld [smem:[#allocation28_spill]]  ;;  %s679_s4 = scalar_lea.vmem [#allocation9], %s3162_s24 }
  0x61   : > { %s686_s6 = sshll.u32 %s679_s4, 4  ;;  %s4269_s6 = int_to_ptr.vmem [resolvable:$true] %s686_s6 }
  0x66   : > { %s4265_s25 = scalar_lea.hbm %s4886_s10, %s3289_s0  ;;  %s3868_s30 = scalar_lea.hbm %s4886_s10, 4096 }
  0x67   : > { %s3863_s16 = scalar_lea.hbm %s4265_s25, 2048  ;;  %p3869_p11 = scmp.lt.u32.totalorder %s4265_s25, %s4886_s10 }
  0x68   : > { %p3864_p1 = scmp.ne.s32.totalorder %s4265_s25, %s3863_s16  ;;  %p3870_p13 = scmp.lt.u32.totalorder %s3868_s30, %s3863_s16 }
  0x69   : > { %p3872_p7 = scmp.lt.u32.totalorder %s3863_s16, %s4265_s25 }
  0x6a   : > { %p3866_p4 = pnand %p3864_p1, %p4192_p10  ;;  %p3871_p0 = por %p3870_p13, %p3869_p11 }
  0x6c   : > { %p3867_p9 = pneg %p3866_p4  ;;  %p3873_p12 = por %p3872_p7, %p3871_p0 }
  0x6e   : > { %p3874_p2 = pnand %p3873_p12, %p3867_p9 }
  0x70   : > { %3877 = shalt.err (!%p3874_p2)
}
  0x71   : > { %s3878_s17 = scalar_lea.vmem %s4269_s6, 2048  ;;  %s4003_s29 = smov [#allocation9]  }
  0x72   : > { %p3879_p3 = scmp.ne.s32.totalorder %s4269_s6, %s3878_s17  ;;  %s3883_s4 = sshll.u32 %s4003_s29, 4  ;;  %s3884_s4 = int_to_ptr.vmem [resolvable:$false] %s3883_s4 }
  0x73   : > { %s3885_s18 = scalar_lea.vmem %s3884_s4, 4096  ;;  %p3886_p1 = scmp.lt.s32.totalorder %s4269_s6, %s3884_s4 }
  0x74   : > { %p3881_p5 = pnand %p3879_p3, %p4192_p10  ;;  %p3887_p4 = scmp.lt.s32.totalorder %s3885_s18, %s3878_s17 }
  0x76   : > { %p3882_p6 = pneg %p3881_p5  ;;  %p3888_p11 = por %p3887_p4, %p3886_p1 }
  0x78   : > { %p3889_p13 = pnand %p3888_p11, %p3882_p6 }
  0x7a   : > { %3892 = shalt.err (!%p3889_p13)
}
  0x7b   : > { %s4004_s16 = smov 128   ;;  %s4005_s21 = smov 8  }
  0x7c   : > { %3582 = dma.hbm_to_vmem [thread:$0]  (!%p4172_p8), %s4265_s25, 2048, %s4269_s6, %s4186_s3, %s4004_s16, %s4004_s16, %s4005_s21  }
  0x7d   : > { %s4887_s12 = sld [smem:[#allocation29_spill]]  ;;  %s707_s17 = scalar_lea.vmem [#allocation10], %s3162_s24 }
  0x7e   : > { %s714_s29 = sshll.u32 %s707_s17, 4  ;;  %s704_s4 = scalar_lea.sflag [#allocation11], %s4170_s22  ;;  %s4302_s29 = int_to_ptr.vmem [resolvable:$true] %s714_s29 }
  0x83   : > { %s4298_s2 = scalar_lea.hbm %s4887_s12, %s3289_s0  ;;  %s3898_s28 = scalar_lea.hbm %s4887_s12, 4096 }
  0x84   : > { %s3893_s18 = scalar_lea.hbm %s4298_s2, 2048  ;;  %p3899_p12 = scmp.lt.u32.totalorder %s4298_s2, %s4887_s12 }
  0x85   : > { %p3894_p9 = scmp.ne.s32.totalorder %s4298_s2, %s3893_s18  ;;  %p3900_p2 = scmp.lt.u32.totalorder %s3898_s28, %s3893_s18 }
  0x86   : > { %p3902_p5 = scmp.lt.u32.totalorder %s3893_s18, %s4298_s2 }
  0x87   : > { %p3896_p0 = pnand %p3894_p9, %p4192_p10  ;;  %p3901_p3 = por %p3900_p2, %p3899_p12 }
  0x89   : > { %p3897_p7 = pneg %p3896_p0  ;;  %p3903_p6 = por %p3902_p5, %p3901_p3 }
  0x8b   : > { %p3904_p1 = pnand %p3903_p6, %p3897_p7 }
  0x8d   : > { %3907 = shalt.err (!%p3904_p1)
}
  0x8e   : > { %s3908_s24 = scalar_lea.vmem %s4302_s29, 2048  ;;  %s4006_s16 = smov [#allocation10]  }
  0x8f   : > { %p3909_p4 = scmp.ne.s32.totalorder %s4302_s29, %s3908_s24  ;;  %s3913_s21 = sshll.u32 %s4006_s16, 4  ;;  %s3914_s21 = int_to_ptr.vmem [resolvable:$false] %s3913_s21 }
  0x90   : > { %s3915_s30 = scalar_lea.vmem %s3914_s21, 4096  ;;  %p3916_p9 = scmp.lt.s32.totalorder %s4302_s29, %s3914_s21 }
  0x91   : > { %p3911_p11 = pnand %p3909_p4, %p4192_p10  ;;  %p3917_p0 = scmp.lt.s32.totalorder %s3915_s30, %s3908_s24 }
  0x93   : > { %p3912_p13 = pneg %p3911_p11  ;;  %p3918_p12 = por %p3917_p0, %p3916_p9 }
  0x95   : > { %p3919_p2 = pnand %p3918_p12, %p3912_p13 }
  0x97   : > { %3922 = shalt.err (!%p3919_p2)
}
  0x98   : > { %s4888_s26 = smov 4   ;;  %s4889_s17 = smov 64  }
  0x99   : > { %3585 = dma.hbm_to_vmem [thread:$0]  (!%p4172_p8), %s4298_s2, 2048, %s4302_s29, %s704_s4, %s4889_s17, %s4889_s17, %s4888_s26  }
  0x9a   : > { %p4890_p10 = scmp.ne.s32.totalorder %s4884_s1, 0 }
  0x9b   : > { %s746_s20 = sand.u32 (!%p4890_p10), 1, %s3987_s27   ;;  %p4891_p7 = scmp.ne.s32.totalorder (!%p4890_p10), %s4880_s5, 0 }
  0x9c   : > { %744 = sbr.rel (%p4890_p10) target bundleno = 4029 (0xfbd), region = 100  ;;  %s747_s6 = scalar_lea.sflag (!%p4890_p10), [#allocation5], %s746_s20 }
  0x9d   : > { %s3559_s18 = smul.u32 (!%p4890_p10), 192, %s746_s20 }
  0x9f   : > { %s4334_s3 = scalar_lea.vmem (!%p4890_p10), [#allocation4], %s3559_s18 }
  0xa3   : > { %3966 = dma.done.wait (%p4891_p7), %s747_s6, 3072  }
  0xa4   : > { %3968 = vsyncadd (%p4891_p7), %s747_s6, 4294964224  ;;  %s755_s22 = sand.u32 1, %s4148_s19   ;;  %s3169_s23 = sshll.u32 %s746_s20, 6 }
  0xa5   : > { %s756_s2 = scalar_lea.sflag [#allocation8], %s755_s22  ;;  %s4341_s29 = scalar_lea.vmem [#allocation7], %s3169_s23 }
  0xa6   : > { %3970 = dma.done.wait (%p4891_p7), %s756_s2, 3072  }
  0xa7   : > { %3972 = vsyncadd (%p4891_p7), %s756_s2, 4294964224  ;;  %s3170_s1 = sshll.u32 %s746_s20, 7  ;;  %s774_s28 = scalar_lea.sflag [#allocation11], %s746_s20 }
  0xa8   : > { %s4347_s4 = scalar_lea.vmem [#allocation9], %s3170_s1  ;;  %s4349_s0 = scalar_lea.vmem [#allocation10], %s3170_s1 }
  0xa9   : > { %3974 = dma.done.wait (%p4891_p7), %s774_s28, 2048  }
  0xaa   : > { %3976 = vsyncadd (%p4891_p7), %s774_s28, 4294965248  ;;  %p872_p8 = scmp.lt.s32.totalorder %s4148_s19, 1  ;;  %s4892_s2 = sld [smem:[#allocation26_spill]] }
  0xab   : > { %p3173_p3 = scmp.ne.s32.totalorder %s4148_s19, 0 }
  0xac   : > { %s4357_s25 = scalar_select %p872_p8, %s4148_s19, 1 }
  0xad   : > { %902 = sbr.rel (%p3173_p3) target bundleno = 496 (0x1f0), region = 120  ;;  %s4893_s10 = sld [smem:[#allocation21_spill]] (!%p3173_p3) }
  0xae   : > { %s3560_s24 = smul.u32 3, %s4357_s25  ;;  %s878_s30 = scalar_lea.vmem %s4833_s7, %s4357_s25 }
  0xaf   : > { %s3172_s28 = sshll.u32 %s4357_s25, 1  ;;  %s891_s5 = scalar_lea.vmem %s4839_s13, %s4357_s25 }
  0xb0   : > { %s4375_s1 = scalar_lea.vmem %s4892_s2, %s3560_s24  ;;  %s4381_s27 = scalar_lea.vmem %s4837_s11, %s3172_s28 }
  0xb1   : > { %s894_s20 = scalar_lea.vmem %s4840_s14, %s4357_s25  ;;  %s897_s22 = scalar_lea.vmem %s4841_s15, %s4357_s25 }
  0xb2   : > { %s4894_s28 = sld [smem:[#allocation23_spill]] (!%p3173_p3)  ;;  %s4895_s26 = sld [smem:[#allocation24_spill]] (!%p3173_p3) }
  0xb3   : > { %v903_v1 = vld [vmem:[%s4893_s10] sm:$0xff] (!%p3173_p3)  ;;  %v904_v2 = vld [vmem:[%s4893_s10 + $0x8] sm:$0xff] (!%p3173_p3) }
  0xb4   : > { %907 = vadd.xlane.f32.xlu0 %v903_v1 }
  0xb8   : > { %909 = vadd.xlane.f32.xlu0 %v904_v2  ;;  %v3174_v18 = vld [vmem:[%s4894_s28] ss:$0 sm:$0xff] }
  0xb9   : > { %v3175_v20 = vld [vmem:[%s4895_s26] ss:$0 sm:$0xff] }
 0x141   : > { %v908_v3 = vpop.xlane.xlu0 %907 }
 0x142   : > { %v912_v4 = vmul.f32 0.0078125, %v908_v3 }
 0x144   : > { %v914_v5 = vsub.f32 %v903_v1, %v912_v4 }
 0x145   : > { %v910_v6 = vpop.xlane.xlu0 %909 }
 0x146   : > { %v913_v7 = vmul.f32 0.0078125, %v910_v6  ;;  %v916_v8 = vmul.f32 %v914_v5, %v914_v5 }
 0x148   : > { %v915_v9 = vsub.f32 %v904_v2, %v913_v7  ;;  %918 = vadd.xlane.f32.xlu1 %v916_v8 }
 0x14a   : > { %v917_v10 = vmul.f32 %v915_v9, %v915_v9 }
 0x14c   : > { %920 = vadd.xlane.f32.xlu1 %v917_v10 }
 0x1d5   : > { %v919_v11 = vpop.xlane.xlu1 %918 }
 0x1d6   : > { %v922_v12 = vmul.f32 0.0078125, %v919_v11 }
 0x1d8   : > { %v924_v13 = vadd.f32 1e-12, %v922_v12 }
 0x1d9   : > { %v921_v14 = vpop.xlane.xlu1 %920 }
 0x1da   : > { %3636 = vrsqrt.f32 %v924_v13  ;;  %v923_v15 = vmul.f32 0.0078125, %v921_v14 }
 0x1dc   : > { %v925_v16 = vadd.f32 1e-12, %v923_v15 }
 0x1de   : > { %3638 = vrsqrt.f32 %v925_v16 }
 0x1e4   : > { %v3637_v17 = vpop.eup %3636 }
 0x1e5   : > { %v928_v19 = vmul.f32 %v3637_v17, %v914_v5 }
 0x1e7   : > { %v936_v21 = vmul.f32 %v3174_v18, %v928_v19 }
 0x1e8   : > { %v3639_v22 = vpop.eup %3638 }
 0x1e9   : > { %v944_v23 = vadd.f32 %v3175_v20, %v936_v21  ;;  %v929_v24 = vmul.f32 %v3639_v22, %v915_v9 }
 0x1eb   : > { %946 = vst [vmem:[#allocation2] sm:$0xff] %v944_v23  ;;  %v937_v25 = vmul.f32 %v3174_v18, %v929_v24 }
 0x1ed   : > { %v945_v26 = vadd.f32 %v3175_v20, %v937_v25 }
 0x1ef   : > { %947 = vst [vmem:[#allocation2 + $0x8] sm:$0xff] %v945_v26 }
 0x1f0 PF: > { %v3655_v27 = vld [vmem:[%s4334_s3 + $0x4] ss:$12 sps:$4 sm:$0xff]   ;;  %v3657_v28 = vld [vmem:[%s4334_s3] ss:$12 sps:$4 sm:$0xff]   ;;  %v4007_v29 = vmov 0   ;;  %v4008_v30 = vmov 0.0   ;;  %v985_v56 = vlaneseq  ;;  %s4898_s26 = scalar_lea.vmem %s4835_s9, %s4357_s25 }
 0x1f1   : > { %1160 = vmatprep.mubr.bf16.mxu0 %v4007_v29  ;;  %3381 = vmatprep.subr.bf16.mxu1 %v4008_v30  ;;  %v3658_v31 = vld [vmem:[%s4334_s3 + $0x1c] ss:$12 sps:$4 sm:$0xff]   ;;  %v3660_v32 = vld [vmem:[%s4334_s3 + $0x18] ss:$12 sps:$4 sm:$0xff]   ;;  %v3661_v33 = vld [vmem:[%s4334_s3 + $0x34] ss:$12 sps:$4 sm:$0xff]  }
 0x1f2   : > { %1128 = vmatprep.subr.bf16.mxu0 %v3655_v27  ;;  %v3663_v34 = vld [vmem:[%s4334_s3 + $0x30] ss:$12 sps:$4 sm:$0xff]   ;;  %v3664_v35 = vld [vmem:[%s4334_s3 + $0x4c] ss:$12 sps:$4 sm:$0xff]   ;;  %v3666_v36 = vld [vmem:[%s4334_s3 + $0x48] ss:$12 sps:$4 sm:$0xff]  }
 0x1f3   : > { %1129 = vmatpush1.bf16.msra.mxu0 %v3657_v28  ;;  %v3667_v37 = vld [vmem:[%s4334_s3 + $0x64] ss:$12 sps:$4 sm:$0xff]   ;;  %v3679_v38 = vld [vmem:[%s4334_s3 + $0x8] ss:$12 sps:$4 sm:$0xff]   ;;  %v3680_v39 = vld [vmem:[%s4334_s3 + $0x20] ss:$12 sps:$4 sm:$0xff]  }
 0x1f4   : > { %1130 = vmatprep.subr.bf16.mxu0 %v3658_v31  ;;  %3382 = vmatpush3.bf16.msra.mxu1 %v3679_v38  ;;  %v3669_v40 = vld [vmem:[%s4334_s3 + $0x60] ss:$12 sps:$4 sm:$0xff]   ;;  %v3670_v41 = vld [vmem:[%s4334_s3 + $0x7c] ss:$12 sps:$4 sm:$0xff]   ;;  %v3681_v42 = vld [vmem:[%s4334_s3 + $0x38] ss:$12 sps:$4 sm:$0xff]  }
 0x1f5   : > { %3383 = vmatprep.subr.bf16.mxu1 %v4008_v30  ;;  %v3672_v43 = vld [vmem:[%s4334_s3 + $0x78] ss:$12 sps:$4 sm:$0xff]   ;;  %v3673_v44 = vld [vmem:[%s4334_s3 + $0x94] ss:$12 sps:$4 sm:$0xff]   ;;  %v3682_v45 = vld [vmem:[%s4334_s3 + $0x50] ss:$12 sps:$4 sm:$0xff]  }
 0x1f6   : > { %v3675_v46 = vld [vmem:[%s4334_s3 + $0x90] ss:$12 sps:$4 sm:$0xff]   ;;  %v3676_v47 = vld [vmem:[%s4334_s3 + $0xac] ss:$12 sps:$4 sm:$0xff]   ;;  %v3683_v48 = vld [vmem:[%s4334_s3 + $0x68] ss:$12 sps:$4 sm:$0xff]  }
 0x1f7   : > { %1131 = vmatpush1.bf16.msra.mxu0 %v3660_v32  ;;  %v3678_v49 = vld [vmem:[%s4334_s3 + $0xa8] ss:$12 sps:$4 sm:$0xff]   ;;  %v3684_v52 = vld [vmem:[%s4334_s3 + $0x80] ss:$12 sps:$4 sm:$0xff]   ;;  %v3685_v54 = vld [vmem:[%s4334_s3 + $0x98] ss:$12 sps:$4 sm:$0xff]  }
 0x1f8   : > { %1132 = vmatprep.subr.bf16.mxu0 %v3661_v33  ;;  %3384 = vmatpush3.bf16.msra.mxu1 %v3680_v39  ;;  %v4434_v50 = vld [vmem:[#allocation2] sm:$0xff]  ;;  %v4436_v51 = vld [vmem:[#allocation2 + $0x8] sm:$0xff]  ;;  %vm4009_vm0 = vmmov 0   ;;  %v4455_v57 = vshrl.u32 %v985_v56, 7  ;;  %vm1223_vm1 = vcmask 261120   ;;  %s4012_s18 = smov 32  }
 0x1f9   : > { %3385 = vmatprep.subr.bf16.mxu1 %v4008_v30  ;;  %v950_v53 = vpack.c.bf16 %v4436_v51, %v4434_v50  ;;  %v3686_v55 = vld [vmem:[%s4334_s3 + $0xb0] ss:$12 sps:$4 sm:$0xff]   ;;  %3397 = vmatprep.mubr.msk.bf16.mxu1 %vm4009_vm0, %v4008_v30  ;;  %s4010_s3 = smov 96   ;;  %vm1286_vm2 = vcmask 1043456   ;;  %s4896_s12 = sld [smem:[#allocation22_spill]]  ;;  %vm1270_vm3 = vcmask 64512  }
 0x1fa   : > { %v987_v58 = vsub.s32 0, %v4455_v57  ;;  %v983_v59 = vld [vmem:[%s4375_s1] sm:$0x7]  ;;  %v991_v60 = vsub.s32 1, %v4455_v57  ;;  %s4011_s1 = smov 64   ;;  %v995_v14 = vsub.s32 2, %v4455_v57 }
 0x1fb   : > { %1133 = vmatpush1.bf16.msra.mxu0 %v3663_v34  ;;  %vm1676_vm4 = vcmask 523264   ;;  %vm1678_vm5 = vcmask 785408   ;;  %p3265_p5 = scmp.ne.s32.totalorder %s4148_s19, 1 }
 0x1fc   : > { %1134 = vmatprep.subr.bf16.mxu0 %v3664_v35  ;;  %3386 = vmatpush3.bf16.msra.mxu1 %v3681_v42  ;;  %v988_v61 = vrot.slane %v983_v59, %v987_v58  ;;  %v992_v62 = vrot.slane %v983_v59, %v991_v60  ;;  %v996_v15 = vrot.slane %v983_v59, %v995_v14  ;;  %vm4014_vm6 = vmmov (!%p3265_p5), 0  }
 0x1fd   : > { %3387 = vmatprep.subr.bf16.mxu1 %v4008_v30  ;;  %vm2717_vm7 = vcmask (!%p3265_p5), 1040384   ;;  %vm2946_vm8 = vcmask (!%p3265_p5), 1024  }
 0x1ff   : > { %1135 = vmatpush1.bf16.msra.mxu0 %v3666_v36  ;;  %v4497_v24 = vld [vmem:[%s4896_s12] ss:$0 sm:$0xff] }
 0x200   : > { %1136 = vmatprep.subr.bf16.mxu0 %v3667_v37  ;;  %3388 = vmatpush3.bf16.msra.mxu1 %v3682_v45 }
 0x201   : > { %3389 = vmatprep.subr.bf16.mxu1 %v4008_v30 }
 0x203   : > { %1137 = vmatpush1.bf16.msra.mxu0 %v3669_v40 }
 0x204   : > { %1138 = vmatprep.subr.bf16.mxu0 %v3670_v41  ;;  %3390 = vmatpush3.bf16.msra.mxu1 %v3683_v48 }
 0x205   : > { %3391 = vmatprep.subr.bf16.mxu1 %v4008_v30 }
 0x207   : > { %1139 = vmatpush1.bf16.msra.mxu0 %v3672_v43 }
 0x208   : > { %1140 = vmatprep.subr.bf16.mxu0 %v3673_v44  ;;  %3392 = vmatpush3.bf16.msra.mxu1 %v3684_v52 }
 0x209   : > { %3393 = vmatprep.subr.bf16.mxu1 %v4008_v30 }
 0x20b   : > { %1141 = vmatpush1.bf16.msra.mxu0 %v3675_v46 }
 0x20c   : > { %1142 = vmatprep.subr.bf16.mxu0 %v3676_v47  ;;  %3394 = vmatpush3.bf16.msra.mxu1 %v3685_v54 }
 0x20d   : > { %3395 = vmatprep.subr.bf16.mxu1 %v4008_v30 }
 0x20f   : > { %1143 = vmatpush1.bf16.msra.mxu0 %v3678_v49 }
 0x210   : > { %3425 = vmatprep.subr.bf16.mxu0 %v4008_v30  ;;  %3396 = vmatpush3.bf16.msra.mxu1 %v3686_v55 }
 0x211   : > { %3401 = vmatprep.subr.bf16.mxu1 %v4008_v30 }
 0x212   : > { %1161 = vmatmul.mubr.bf16.vlgmr.msra.gmra.mrb[0].mxu0 %v950_v53 }
 0x213   : > { %3427 = vmatprep.mubr.msk.bf16.mxu0 %vm4009_vm0, %v4008_v30  ;;  %3398 = vmatmul.mubr.bf16.vlgmr.msra.gmra.mrb[0].mxu1 %v950_v53 }
 0x214   : > { %3403 = vmatprep.mubr.msk.bf16.mxu1 %vm4009_vm0, %v4008_v30 }
 0x2e5   : > { %v1162_v63 = vpop.f32.mrb[0].mxu0 }
 0x2e6   : > { %v1163_v0 = vadd.f32 %v1162_v63, %v988_v61  ;;  %v1164_v1 = vpop.f32.mrb[1].mxu0  ;;  %v1205_v16 = vpop.f32.mrb[0].mxu1 }
 0x2e7   : > { %v1165_v2 = vadd.f32 %v1164_v1, %v992_v62  ;;  %v1166_v3 = vpop.f32.mrb[2].mxu0  ;;  %v1206_v17 = vadd.f32 %v1205_v16, %v996_v15  ;;  %v3399_v18 = vpop.f32.mrb[1].mxu1 }
 0x2e8   : > { %v1168_v4 = vpop.f32.mrb[3].mxu0  ;;  %v1212_v5 = vmul.f32 0.17677669, %v1163_v0  ;;  %v1167_v9 = vadd.f32 %v1166_v3, %v988_v61  ;;  %v1208_v19 = vpop.f32.mrb[2].mxu1 }
 0x2e9   : > { %v1214_v6 = vpack.c.bf16 %v1165_v2, %v1165_v2  ;;  %v1169_v10 = vadd.f32 %v1168_v4, %v992_v62  ;;  %v4487_v20 = vpack.c.bf16 %v1206_v17, %v1206_v17  ;;  %v4489_v21 = vadd.f32 %v1208_v19, %v996_v15  ;;  %v3400_v22 = vpop.f32.mrb[3].mxu1 }
 0x2ea   : > { %v1213_v8 = vpack.c.bf16 %v1212_v5, %v1212_v5  ;;  %v1680_v11 = vmul.f32 0.17677669, %v1167_v9 }
 0x2eb   : > { %1334 = vrot.lane.b32.xlu1 %v1214_v6, %s4010_s3  ;;  %v1228_v7 = vsel %vm1223_vm1, %v1214_v6, 0  ;;  %v4474_v12 = vpack.c.bf16 %v1169_v10, %v1169_v10  ;;  %v1288_v23 = vsel %vm1286_vm2, %v4487_v20, 0 }
 0x2ec   : > { %3402 = vmatpush3.bf16.xpose.msra.mxu1 %v1228_v7  ;;  %v4478_v13 = vpack.c.bf16 %v1680_v11, %v1680_v11 }
 0x2ed   : > { %3407 = vmatprep.subr.bf16.mxu1 %v4008_v30  ;;  %v1696_v53 = vsel %vm1223_vm1, %v4474_v12, 0 }
 0x2ef   : > { %1331 = vrot.lane.b32.xlu1 %v1213_v8, %s4010_s3 }
 0x2f3   : > { %1443 = vrot.lane.b32.xlu1 %v1213_v8, %s4011_s1  ;;  %3404 = vmatmul.mubr.msk.bf16.vlgmr.msra.gmra.mrb[4].mxu1 %vm1223_vm1, %v1213_v8 }
 0x2f4   : > { %3409 = vmatprep.mubr.msk.bf16.mxu1 %vm4009_vm0, %v4008_v30  ;;  %3408 = vmatpush3.bf16.msra.mxu1 %v1288_v23 }
 0x2f5   : > { %3413 = vmatprep.subr.bf16.mxu1 %v4008_v30 }
 0x2f7   : > { %1555 = vrot.lane.b32.xlu1 %v1214_v6, %s4012_s18 }
 0x2fb   : > { %1553 = vrot.lane.b32.xlu1 %v1213_v8, %s4012_s18 }
 0x2ff   : > { %1800 = vrot.lane.b32.xlu1 %v4474_v12, %s4010_s3 }
 0x303   : > { %1797 = vrot.lane.b32.xlu1 %v4478_v13, %s4010_s3 }
 0x307   : > { %1911 = vrot.lane.b32.xlu1 %v4474_v12, %s4011_s1 }
 0x30b   : > { %2021 = vrot.lane.b32.xlu1 %v4474_v12, %s4012_s18 }
 0x35d   : > { %v1335_v38 = vpop.permute.xlu1 %1334 }
 0x35e   : > { %v1340_v49 = vsel %vm1223_vm1, %v1335_v38, 0 }
 0x361   : > { %v1332_v39 = vpop.permute.xlu1 %1331 }
 0x365   : > { %v1444_v41 = vpop.permute.xlu1 %1443 }
 0x369   : > { %v1556_v44 = vpop.permute.xlu1 %1555 }
 0x36a   : > { %v1561_v47 = vsel %vm1223_vm1, %v1556_v44, 0 }
 0x36d   : > { %v1554_v52 = vpop.permute.xlu1 %1553 }
 0x371   : > { %v1801_v54 = vpop.permute.xlu1 %1800 }
 0x372   : > { %v1806_v56 = vsel %vm1223_vm1, %v1801_v54, 0 }
 0x375   : > { %v1798_v55 = vpop.permute.xlu1 %1797 }
 0x379   : > { %v1912_v59 = vpop.permute.xlu1 %1911 }
 0x37a   : > { %v1917_v61 = vsel %vm1223_vm1, %v1912_v59, 0 }
 0x37d   : > { %v2022_v62 = vpop.permute.xlu1 %2021 }
 0x37e   : > { %v2027_v0 = vsel %vm1223_vm1, %v2022_v62, 0 }
 0x3c6   : > { %v1264_v25 = vpop.f32.mrb[4].mxu1 }
 0x3c7   : > { %v1265_v26 = vadd.f32 %v4497_v24, %v1264_v25  ;;  %v3405_v27 = vpop.f32.mrb[5].mxu1 }
 0x3c8   : > { %v1267_v28 = vpop.f32.mrb[6].mxu1  ;;  %v3210_v27 = vld [vmem:[%s4896_s12 + $0x1] ss:$0 sm:$0xff] }
 0x3c9   : > { %v3406_v31 = vpop.f32.mrb[7].mxu1  ;;  %v1271_v32 = vsel %vm1270_vm3, %v1265_v26, -inf }
 0x3ca   : > { %1272 = vmax.xlane.f32.xlu0 %v1271_v32 }
 0x457   : > { %v1273_v33 = vpop.xlane.xlu0 %1272 }
 0x458   : > { %v1274_v34 = vsub.f32 %v1265_v26, %v1273_v33 }
 0x45a   : > { %v1275_v35 = vmul.f32 1.442695, %v1274_v34 }
 0x45c   : > { %3735 = vpow2.f32 %v1275_v35 }
 0x466   : > { %v3736_v36 = vpop.eup %3735 }
 0x467   : > { %v1277_v37 = vsel %vm1270_vm3, %v3736_v36, 0.0 }
 0x468   : > { %1278 = vadd.xlane.f32.xlu0 %v1277_v37 }
 0x47e   : > { %1445 = vrot.lane.b32.xlu0 %v1214_v6, %s4011_s1 }
 0x482   : > { %1909 = vrot.lane.b32.xlu0 %v4478_v13, %s4011_s1 }
 0x486   : > { %2019 = vrot.lane.b32.xlu0 %v4478_v13, %s4012_s18 }
 0x4f5   : > { %v1279_v40 = vpop.xlane.xlu0 %1278 }
 0x4f6   : > { %3737 = vrcp.f32 %v1279_v40 }
 0x4f9   : > { %v1446_v42 = vpop.permute.xlu0 %1445 }
 0x4fa   : > { %v1451_v43 = vsel %vm1223_vm1, %v1446_v42, 0 }
 0x4fb   : > { %3426 = vmatpush3.bf16.xpose.msra.mxu0 %v1451_v43 }
 0x4fc   : > { %3437 = vmatprep.subr.bf16.mxu0 %v4008_v30 }
 0x4fd   : > { %v1910_v63 = vpop.permute.xlu0 %1909 }
 0x500   : > { %v3738_v45 = vpop.eup %3737 }
 0x501   : > { %v1281_v46 = vmul.f32 %v3738_v45, %v3736_v36  ;;  %v2020_v1 = vpop.permute.xlu0 %2019 }
 0x502   : > { %3428 = vmatmul.mubr.msk.bf16.vlgmr.msra.gmra.mrb[4].mxu0 %vm1223_vm1, %v1444_v41 }
 0x503   : > { %3438 = vmatpush3.bf16.xpose.msra.mxu0 %v1561_v47  ;;  %v1282_v48 = vpack.c.bf16 %v1281_v46, %v1281_v46  ;;  %3439 = vmatprep.mubr.msk.bf16.mxu0 %vm4009_vm0, %v4008_v30 }
 0x504   : > { %3449 = vmatprep.subr.bf16.mxu0 %v4008_v30 }
 0x505   : > { %3410 = vmatmul.mubr.msk.bf16.vlgmr.msra.gmra.mrb[8].mxu1 %vm1270_vm3, %v1282_v48 }
 0x506   : > { %3414 = vmatpush3.bf16.xpose.msra.mxu1 %v1340_v49  ;;  %3415 = vmatprep.mubr.msk.bf16.mxu1 %vm4009_vm0, %v4008_v30 }
 0x507   : > { %3419 = vmatprep.subr.bf16.mxu1 %v4008_v30 }
 0x50a   : > { %3440 = vmatmul.mubr.msk.bf16.vlgmr.msra.gmra.mrb[8].mxu0 %vm1223_vm1, %v1554_v52 }
 0x50b   : > { %3450 = vmatpush3.bf16.xpose.msra.mxu0 %v1696_v53  ;;  %3451 = vmatprep.mubr.msk.bf16.mxu0 %vm4009_vm0, %v4008_v30 }
 0x50c   : > { %3461 = vmatprep.subr.bf16.mxu0 %v4008_v30 }
 0x50d   : > { %3416 = vmatmul.mubr.msk.bf16.vlgmr.msra.gmra.mrb[12].mxu1 %vm1223_vm1, %v1332_v39 }
 0x50e   : > { %3421 = vmatprep.mubr.msk.bf16.mxu1 %vm4009_vm0, %v4008_v30 }
 0x512   : > { %3452 = vmatmul.mubr.msk.bf16.vlgmr.msra.gmra.mrb[12].mxu0 %vm1223_vm1, %v4478_v13 }
 0x513   : > { %3462 = vmatpush3.bf16.xpose.msra.mxu0 %v1806_v56  ;;  %3463 = vmatprep.mubr.msk.bf16.mxu0 %vm4009_vm0, %v4008_v30 }
 0x514   : > { %3473 = vmatprep.subr.bf16.mxu0 %v4008_v30 }
 0x51a   : > { %3464 = vmatmul.mubr.msk.bf16.vlgmr.msra.gmra.mrb[16].mxu0 %vm1223_vm1, %v1798_v55 }
 0x51b   : > { %3474 = vmatpush3.bf16.xpose.msra.mxu0 %v1917_v61  ;;  %3475 = vmatprep.mubr.msk.bf16.mxu0 %vm4009_vm0, %v4008_v30 }
 0x51c   : > { %3485 = vmatprep.subr.bf16.mxu0 %v4008_v30 }
 0x522   : > { %3476 = vmatmul.mubr.msk.bf16.vlgmr.msra.gmra.mrb[20].mxu0 %vm1223_vm1, %v1910_v63 }
 0x523   : > { %3486 = vmatpush3.bf16.xpose.msra.mxu0 %v2027_v0  ;;  %3487 = vmatprep.mubr.msk.bf16.mxu0 %vm4009_vm0, %v4008_v30 }
 0x524   : > { %3497 = vmatprep.subr.bf16.mxu0 %v4008_v30 }
 0x52a   : > { %3488 = vmatmul.mubr.msk.bf16.vlgmr.msra.gmra.mrb[24].mxu0 %vm1223_vm1, %v2020_v1 }
 0x52b   : > { %3513 = vmatprep.mubr.msk.bf16.mxu0 %vm4009_vm0, %v4008_v30 }
 0x5d5   : > { %v1487_v2 = vpop.f32.mrb[4].mxu0 }
 0x5d6   : > { %v1488_v3 = vadd.f32 %v4497_v24, %v1487_v2  ;;  %v3429_v4 = vpop.f32.mrb[5].mxu0 }
 0x5d7   : > { %v1490_v5 = vpop.f32.mrb[6].mxu0 }
 0x5d8   : > { %v4548_v6 = vpop.f32.mrb[8].mxu1  ;;  %v3430_v7 = vpop.f32.mrb[7].mxu0  ;;  %v1493_v8 = vsel %vm1270_vm3, %v1488_v3, -inf }
 0x5d9   : > { %1494 = vmax.xlane.f32.xlu0 %v1493_v8  ;;  %v3411_v9 = vpop.f32.mrb[9].mxu1 }
 0x5da   : > { %v1327_v10 = vpop.f32.mrb[10].mxu1 }
 0x5db   : > { %v3412_v11 = vpop.f32.mrb[11].mxu1 }
 0x5dd   : > { %v1597_v12 = vpop.f32.mrb[8].mxu0 }
 0x5de   : > { %v1598_v13 = vadd.f32 %v4497_v24, %v1597_v12  ;;  %v3441_v14 = vpop.f32.mrb[9].mxu0 }
 0x5df   : > { %v1600_v15 = vpop.f32.mrb[10].mxu0 }
 0x5e0   : > { %v1376_v16 = vpop.f32.mrb[12].mxu1  ;;  %v3442_v17 = vpop.f32.mrb[11].mxu0  ;;  %v1603_v18 = vsel %vm1270_vm3, %v1598_v13, -inf }
 0x5e1   : > { %v1377_v19 = vadd.f32 %v4497_v24, %v1376_v16  ;;  %1604 = vmax.xlane.f32.xlu0 %v1603_v18  ;;  %v3417_v22 = vpop.f32.mrb[13].mxu1 }
 0x5e2   : > { %v1379_v23 = vpop.f32.mrb[14].mxu1 }
 0x5e3   : > { %v3418_v25 = vpop.f32.mrb[15].mxu1  ;;  %v1382_v26 = vsel %vm1270_vm3, %v1377_v19, -inf }
 0x5e4   : > { %1383 = vmax.xlane.f32.xlu1 %v1382_v26 }
 0x5e5   : > { %v1732_v28 = vpop.f32.mrb[12].mxu0 }
 0x5e6   : > { %v1733_v31 = vadd.f32 %v3210_v27, %v1732_v28  ;;  %v3453_v32 = vpop.f32.mrb[13].mxu0 }
 0x5e7   : > { %v1735_v33 = vpop.f32.mrb[14].mxu0 }
 0x5e8   : > { %v3454_v34 = vpop.f32.mrb[15].mxu0  ;;  %v1738_v35 = vsel %vm1270_vm3, %v1733_v31, -inf }
 0x5e9   : > { %1739 = vmax.xlane.f32.xlu1 %v1738_v35  ;;  %v1683_v34 = vpack.c.bf16 %v4489_v21, %v4489_v21 }
 0x5ed   : > { %v1842_v24 = vpop.f32.mrb[16].mxu0 }
 0x5ee   : > { %v1843_v36 = vadd.f32 %v3210_v27, %v1842_v24  ;;  %v3465_v37 = vpop.f32.mrb[17].mxu0 }
 0x5ef   : > { %v1845_v38 = vpop.f32.mrb[18].mxu0 }
 0x5f0   : > { %v3466_v39 = vpop.f32.mrb[19].mxu0  ;;  %v1848_v40 = vsel %vm1270_vm3, %v1843_v36, -inf }
 0x5f1   : > { %1849 = vmax.xlane.f32.xlu0 %v1848_v40 }
 0x5f5   : > { %v1953_v41 = vpop.f32.mrb[20].mxu0 }
 0x5f6   : > { %v1954_v42 = vadd.f32 %v3210_v27, %v1953_v41  ;;  %v3477_v43 = vpop.f32.mrb[21].mxu0 }
 0x5f7   : > { %v1956_v44 = vpop.f32.mrb[22].mxu0 }
 0x5f8   : > { %v3478_v45 = vpop.f32.mrb[23].mxu0  ;;  %v1959_v46 = vsel %vm1270_vm3, %v1954_v42, -inf }
 0x5f9   : > { %1960 = vmax.xlane.f32.xlu1 %v1959_v46 }
 0x5fd   : > { %v2063_v47 = vpop.f32.mrb[24].mxu0 }
 0x5fe   : > { %v2064_v48 = vadd.f32 %v3210_v27, %v2063_v47  ;;  %v3489_v49 = vpop.f32.mrb[25].mxu0 }
 0x5ff   : > { %v2066_v52 = vpop.f32.mrb[26].mxu0 }
 0x600   : > { %v3490_v53 = vpop.f32.mrb[27].mxu0  ;;  %v2069_v54 = vsel %vm1270_vm3, %v2064_v48, -inf }
 0x601   : > { %2070 = vmax.xlane.f32.xlu0 %v2069_v54 }
 0x666   : > { %v1495_v55 = vpop.xlane.xlu0 %1494 }
 0x667   : > { %v1496_v56 = vsub.f32 %v1488_v3, %v1495_v55 }
 0x669   : > { %v1497_v59 = vmul.f32 1.442695, %v1496_v56  ;;  %v1754_v56 = vsel %vm1286_vm2, %v1683_v34, 0 }
 0x66b   : > { %3739 = vpow2.f32 %v1497_v59 }
 0x66e   : > { %v1605_v61 = vpop.xlane.xlu0 %1604 }
 0x66f   : > { %v1606_v62 = vsub.f32 %v1598_v13, %v1605_v61 }
 0x671   : > { %v1607_v63 = vmul.f32 1.442695, %v1606_v62  ;;  %v1384_v0 = vpop.xlane.xlu1 %1383 }
 0x672   : > { %v1385_v1 = vsub.f32 %v1377_v19, %v1384_v0 }
 0x673   : > { %3741 = vpow2.f32 %v1607_v63 }
 0x674   : > { %v1386_v2 = vmul.f32 1.442695, %v1385_v1 }
 0x675   : > { %v4562_v4 = vpop.eup %3739 }
 0x676   : > { %3743 = vpow2.f32 %v1386_v2  ;;  %v1740_v5 = vpop.xlane.xlu1 %1739  ;;  %v1499_v7 = vsel %vm1270_vm3, %v4562_v4, 0.0 }
 0x677   : > { %v1741_v8 = vsub.f32 %v1733_v31, %v1740_v5  ;;  %1500 = vadd.xlane.f32.xlu0 %v1499_v7 }
 0x679   : > { %v1742_v9 = vmul.f32 1.442695, %v1741_v8 }
 0x67b   : > { %3745 = vpow2.f32 %v1742_v9 }
 0x67d   : > { %v4566_v3 = vpop.eup %3741 }
 0x67e   : > { %v1850_v10 = vpop.xlane.xlu0 %1849  ;;  %v1609_v11 = vsel %vm1270_vm3, %v4566_v3, 0.0 }
 0x67f   : > { %v1851_v12 = vsub.f32 %v1843_v36, %v1850_v10  ;;  %1610 = vadd.xlane.f32.xlu1 %v1609_v11 }
 0x680   : > { %v3744_v13 = vpop.eup %3743 }
 0x681   : > { %v1852_v14 = vmul.f32 1.442695, %v1851_v12  ;;  %v1388_v15 = vsel %vm1270_vm3, %v3744_v13, 0.0 }
 0x683   : > { %3747 = vpow2.f32 %v1852_v14  ;;  %1389 = vadd.xlane.f32.xlu1 %v1388_v15 }
 0x685   : > { %v4571_v16 = vpop.eup %3745 }
 0x686   : > { %v1744_v17 = vsel %vm1270_vm3, %v4571_v16, 0.0  ;;  %v1961_v22 = vpop.xlane.xlu1 %1960 }
 0x687   : > { %1745 = vadd.xlane.f32.xlu0 %v1744_v17  ;;  %v1962_v23 = vsub.f32 %v1954_v42, %v1961_v22 }
 0x689   : > { %v1963_v25 = vmul.f32 1.442695, %v1962_v23 }
 0x68b   : > { %3749 = vpow2.f32 %v1963_v25 }
 0x68d   : > { %v4575_v18 = vpop.eup %3747 }
 0x68e   : > { %v1854_v19 = vsel %vm1270_vm3, %v4575_v18, 0.0  ;;  %v2071_v26 = vpop.xlane.xlu0 %2070 }
 0x68f   : > { %1855 = vadd.xlane.f32.xlu0 %v1854_v19  ;;  %v2072_v27 = vsub.f32 %v2064_v48, %v2071_v26 }
 0x691   : > { %v2073_v31 = vmul.f32 1.442695, %v2072_v27 }
 0x693   : > { %3751 = vpow2.f32 %v2073_v31 }
 0x694   : > { %1395 = vrot.lane.b32.xlu1 %v4487_v20, %s4010_s3 }
 0x695   : > { %v4585_v28 = vpop.eup %3749 }
 0x696   : > { %v1965_v32 = vsel %vm1270_vm3, %v4585_v28, 0.0 }
 0x69d   : > { %v4589_v33 = vpop.eup %3751 }
 0x69e   : > { %v2075_v35 = vsel %vm1270_vm3, %v4589_v33, 0.0 }
 0x6a5   : > { %1505 = vrot.lane.b32.xlu0 %v4487_v20, %s4011_s1 }
 0x6a9   : > { %1615 = vrot.lane.b32.xlu0 %v4487_v20, %s4012_s18 }
 0x6b8   : > { %1966 = vadd.xlane.f32.xlu1 %v1965_v32 }
 0x6c8   : > { %2076 = vadd.xlane.f32.xlu0 %v2075_v35 }
 0x6c9   : > { %1861 = vrot.lane.b32.xlu1 %v1683_v34, %s4010_s3 }
 0x6cd   : > { %2081 = vrot.lane.b32.xlu1 %v1683_v34, %s4012_s18 }
 0x6de   : > { %1971 = vrot.lane.b32.xlu0 %v1683_v34, %s4011_s1 }
 0x704   : > { %v1501_v36 = vpop.xlane.xlu0 %1500 }
 0x70c   : > { %v1611_v20 = vpop.xlane.xlu1 %1610 }
 0x710   : > { %v1390_v24 = vpop.xlane.xlu1 %1389 }
 0x711   : > { %3753 = vrcp.f32 %v1390_v24  ;;  %v3688_v24 = vld [vmem:[%s4341_s29 + $0x8] sm:$0xff]  }
 0x712   : > { %3755 = vrcp.f32 %v1501_v36  ;;  %v3689_v36 = vld [vmem:[%s4341_s29 + $0x10] sm:$0xff]  }
 0x713   : > { %3757 = vrcp.f32 %v1611_v20 }
 0x714   : > { %v1396_v37 = vpop.permute.xlu1 %1395  ;;  %v1746_v21 = vpop.xlane.xlu0 %1745 }
 0x715   : > { %v1401_v38 = vsel %vm1286_vm2, %v1396_v37, 0  ;;  %3759 = vrcp.f32 %v1746_v21  ;;  %v3690_v37 = vld [vmem:[%s4341_s29 + $0x18] sm:$0xff]  }
 0x716   : > { %3420 = vmatpush3.bf16.msra.mxu1 %v1401_v38 }
 0x717   : > { %3431 = vmatprep.subr.bf16.mxu1 %v4008_v30 }
 0x71b   : > { %v3754_v39 = vpop.eup %3753 }
 0x71c   : > { %v1392_v40 = vmul.f32 %v3754_v39, %v3744_v13  ;;  %v1856_v41 = vpop.xlane.xlu0 %1855  ;;  %v3756_v43 = vpop.eup %3755 }
 0x71d   : > { %v1503_v46 = vmul.f32 %v3756_v43, %v4562_v4  ;;  %v3758_v49 = vpop.eup %3757  ;;  %3761 = vrcp.f32 %v1856_v41  ;;  %v3692_v43 = vld [vmem:[%s4341_s29 + $0x28] sm:$0xff]  }
 0x71e   : > { %v1393_v42 = vpack.c.bf16 %v1392_v40, %v1392_v40  ;;  %v1613_v53 = vmul.f32 %v3758_v49, %v4566_v3  ;;  %v3691_v40 = vld [vmem:[%s4341_s29 + $0x20] sm:$0xff]  }
 0x71f   : > { %v1504_v48 = vpack.c.bf16 %v1503_v46, %v1503_v46  ;;  %v3760_v55 = vpop.eup %3759 }
 0x720   : > { %v1506_v44 = vpop.permute.xlu0 %1505  ;;  %3422 = vmatmul.mubr.msk.bf16.vlgmr.msra.gmra.mrb[16].mxu1 %vm1270_vm3, %v1393_v42  ;;  %v1614_v54 = vpack.c.bf16 %v1613_v53, %v1613_v53  ;;  %v1748_v59 = vmul.f32 %v3760_v55, %v4571_v16  ;;  %v3687_v16 = vld [vmem:[%s4341_s29] sm:$0xff]  }
 0x721   : > { %v1511_v45 = vsel %vm1286_vm2, %v1506_v44, 0  ;;  %3433 = vmatprep.mubr.msk.bf16.mxu1 %vm4009_vm0, %v4008_v30  ;;  %3498 = vmatpush3.bf16.msra.mxu0 %v3687_v16  ;;  %v3693_v44 = vld [vmem:[%s4341_s29 + $0x30] sm:$0xff]  }
 0x722   : > { %3432 = vmatpush3.bf16.msra.mxu1 %v1511_v45  ;;  %v1749_v61 = vpack.c.bf16 %v1748_v59, %v1748_v59  ;;  %3499 = vmatprep.subr.bf16.mxu0 %v4008_v30  ;;  %v3694_v45 = vld [vmem:[%s4341_s29 + $0x38] sm:$0xff]  }
 0x723   : > { %3443 = vmatprep.subr.bf16.mxu1 %v4008_v30 }
 0x724   : > { %v1616_v47 = vpop.permute.xlu0 %1615 }
 0x725   : > { %v1621_v52 = vsel %vm1286_vm2, %v1616_v47, 0  ;;  %3500 = vmatpush3.bf16.msra.mxu0 %v3688_v24  ;;  %v3706_v24 = vld [vmem:[%s4347_s4 + $0x34] ss:$8 sps:$4 sm:$0xff]  }
 0x726   : > { %3501 = vmatprep.subr.bf16.mxu0 %v4008_v30 }
 0x727   : > { %v3762_v62 = vpop.eup %3761 }
 0x728   : > { %3434 = vmatmul.mubr.msk.bf16.vlgmr.msra.gmra.mrb[20].mxu1 %vm1270_vm3, %v1504_v48  ;;  %v1858_v0 = vmul.f32 %v3762_v62, %v4575_v18 }
 0x729   : > { %3444 = vmatpush3.bf16.msra.mxu1 %v1621_v52  ;;  %3445 = vmatprep.mubr.msk.bf16.mxu1 %vm4009_vm0, %v4008_v30 }
 0x72a   : > { %3455 = vmatprep.subr.bf16.mxu1 %v4008_v30  ;;  %v1859_v4 = vpack.c.bf16 %v1858_v0, %v1858_v0  ;;  %3502 = vmatpush3.bf16.msra.mxu0 %v3689_v36  ;;  %v3704_v36 = vld [vmem:[%s4347_s4 + $0x30] ss:$8 sps:$4 sm:$0xff]  }
 0x72b   : > { %3503 = vmatprep.subr.bf16.mxu0 %v4008_v30 }
 0x72e   : > { %3504 = vmatpush3.bf16.msra.mxu0 %v3690_v37  ;;  %v3709_v37 = vld [vmem:[%s4347_s4 + $0x44] ss:$8 sps:$4 sm:$0xff]  }
 0x72f   : > { %3505 = vmatprep.subr.bf16.mxu0 %v4008_v30 }
 0x730   : > { %3446 = vmatmul.mubr.msk.bf16.vlgmr.msra.gmra.mrb[24].mxu1 %vm1270_vm3, %v1614_v54 }
 0x731   : > { %3456 = vmatpush3.bf16.msra.mxu1 %v1754_v56  ;;  %3457 = vmatprep.mubr.msk.bf16.mxu1 %vm4009_vm0, %v4008_v30 }
 0x732   : > { %3467 = vmatprep.subr.bf16.mxu1 %v4008_v30  ;;  %3506 = vmatpush3.bf16.msra.mxu0 %v3691_v40  ;;  %v3715_v40 = vld [vmem:[%s4347_s4 + $0x64] ss:$8 sps:$4 sm:$0xff]  }
 0x733   : > { %3507 = vmatprep.subr.bf16.mxu0 %v4008_v30 }
 0x736   : > { %3508 = vmatpush3.bf16.msra.mxu0 %v3692_v43  ;;  %v3716_v43 = vld [vmem:[%s4347_s4 + $0x70] ss:$8 sps:$4 sm:$0xff]  }
 0x737   : > { %3509 = vmatprep.subr.bf16.mxu0 %v4008_v30 }
 0x738   : > { %3458 = vmatmul.mubr.msk.bf16.vlgmr.msra.gmra.mrb[28].mxu1 %vm1270_vm3, %v1749_v61 }
 0x739   : > { %3469 = vmatprep.mubr.msk.bf16.mxu1 %vm4009_vm0, %v4008_v30 }
 0x73a   : > { %3510 = vmatpush3.bf16.msra.mxu0 %v3693_v44 }
 0x73b   : > { %3511 = vmatprep.subr.bf16.mxu0 %v4008_v30 }
 0x73e   : > { %3512 = vmatpush3.bf16.msra.mxu0 %v3694_v45 }
 0x745   : > { %v1967_v63 = vpop.xlane.xlu1 %1966 }
 0x746   : > { %3763 = vrcp.f32 %v1967_v63 }
 0x749   : > { %v1862_v1 = vpop.permute.xlu1 %1861 }
 0x74a   : > { %v1867_v2 = vsel %vm1286_vm2, %v1862_v1, 0 }
 0x74b   : > { %3468 = vmatpush3.bf16.msra.mxu1 %v1867_v2 }
 0x74c   : > { %3479 = vmatprep.subr.bf16.mxu1 %v4008_v30 }
 0x74d   : > { %v2082_v10 = vpop.permute.xlu1 %2081 }
 0x74e   : > { %3470 = vmatmul.mubr.msk.bf16.vlgmr.msra.gmra.mrb[32].mxu1 %vm1270_vm3, %v1859_v4  ;;  %v2087_v12 = vsel %vm1286_vm2, %v2082_v10, 0 }
 0x74f   : > { %3481 = vmatprep.mubr.msk.bf16.mxu1 %vm4009_vm0, %v4008_v30 }
 0x750   : > { %v3764_v5 = vpop.eup %3763 }
 0x751   : > { %v1969_v8 = vmul.f32 %v3764_v5, %v4585_v28 }
 0x753   : > { %v1970_v11 = vpack.c.bf16 %v1969_v8, %v1969_v8 }
 0x755   : > { %v2077_v7 = vpop.xlane.xlu0 %2076 }
 0x756   : > { %3765 = vrcp.f32 %v2077_v7 }
 0x759   : > { %v1972_v9 = vpop.permute.xlu0 %1971 }
 0x75a   : > { %v1977_v3 = vsel %vm1286_vm2, %v1972_v9, 0 }
 0x75b   : > { %3480 = vmatpush3.bf16.msra.mxu1 %v1977_v3 }
 0x75c   : > { %3491 = vmatprep.subr.bf16.mxu1 %v4008_v30 }
 0x75e   : > { %3482 = vmatmul.mubr.msk.bf16.vlgmr.msra.gmra.mrb[36].mxu1 %vm1270_vm3, %v1970_v11 }
 0x75f   : > { %3492 = vmatpush3.bf16.msra.mxu1 %v2087_v12  ;;  %3493 = vmatprep.mubr.msk.bf16.mxu1 %vm4009_vm0, %v4008_v30 }
 0x760   : > { %v3766_v13 = vpop.eup %3765 }
 0x761   : > { %v2079_v14 = vmul.f32 %v3766_v13, %v4589_v33  ;;  %v3219_v13 = vld [vmem:[%s878_s30] ss:$0 sm:$0xff]  ;;  %s4900_s30 = sld [smem:[#allocation32_spill]] (!%p3265_p5) }
 0x763   : > { %v2080_v15 = vpack.c.bf16 %v2079_v14, %v2079_v14 }
 0x766   : > { %3494 = vmatmul.mubr.msk.bf16.vlgmr.msra.gmra.mrb[40].mxu1 %vm1270_vm3, %v2080_v15 }
 0x767   : > { %2441 = vmatprep.mubr.bf16.mxu1 %v4007_v29 }
 0x7f3   : > { %v1437_v17 = vpop.f32.mrb[16].mxu1 }
 0x7f4   : > { %v3423_v18 = vpop.f32.mrb[17].mxu1 }
 0x7f5   : > { %v1440_v19 = vpop.f32.mrb[18].mxu1 }
 0x7f6   : > { %v3424_v22 = vpop.f32.mrb[19].mxu1 }
 0x7fb   : > { %v1547_v23 = vpop.f32.mrb[20].mxu1 }
 0x7fc   : > { %v3435_v25 = vpop.f32.mrb[21].mxu1 }
 0x7fd   : > { %v1550_v26 = vpop.f32.mrb[22].mxu1  ;;  %v3697_v25 = vld [vmem:[%s4347_s4 + $0x4] ss:$8 sps:$4 sm:$0xff]  }
 0x7fe   : > { %v3436_v27 = vpop.f32.mrb[23].mxu1  ;;  %v3700_v26 = vld [vmem:[%s4347_s4 + $0x14] ss:$8 sps:$4 sm:$0xff]   ;;  %2409 = vmatprep.subr.bf16.mxu1 %v3697_v25 }
 0x7ff   : > { %v3698_v27 = vld [vmem:[%s4347_s4 + $0x10] ss:$8 sps:$4 sm:$0xff]  }
 0x803   : > { %v1657_v28 = vpop.f32.mrb[24].mxu1 }
 0x804   : > { %v3447_v31 = vpop.f32.mrb[25].mxu1 }
 0x805   : > { %v1660_v32 = vpop.f32.mrb[26].mxu1 }
 0x806   : > { %v3448_v33 = vpop.f32.mrb[27].mxu1 }
 0x80b   : > { %v1790_v29 = vpop.f32.mrb[28].mxu1 }
 0x80c   : > { %v3459_v34 = vpop.f32.mrb[29].mxu1 }
 0x80d   : > { %v1793_v35 = vpop.f32.mrb[30].mxu1 }
 0x80e   : > { %v3460_v20 = vpop.f32.mrb[31].mxu1  ;;  %v3703_v35 = vld [vmem:[%s4347_s4 + $0x24] ss:$8 sps:$4 sm:$0xff]  }
 0x80f   : > { %v3701_v20 = vld [vmem:[%s4347_s4 + $0x20] ss:$8 sps:$4 sm:$0xff]  }
 0x821   : > { %v1903_v38 = vpop.f32.mrb[32].mxu1 }
 0x822   : > { %v3640_v21 = vpack.i.bf16 %v1903_v38, %v1437_v17  ;;  %v3471_v39 = vpop.f32.mrb[33].mxu1  ;;  %v3707_v38 = vld [vmem:[%s4347_s4 + $0x40] ss:$8 sps:$4 sm:$0xff]  }
 0x823   : > { %v1906_v41 = vpop.f32.mrb[34].mxu1  ;;  %v3710_v39 = vld [vmem:[%s4347_s4 + $0x50] ss:$8 sps:$4 sm:$0xff]  }
 0x824   : > { %3641 = vrot.lane.b32.xlu1 %v3640_v21, %s4012_s18  ;;  %v3472_v42 = vpop.f32.mrb[35].mxu1  ;;  %v3712_v21 = vld [vmem:[%s4347_s4 + $0x54] ss:$8 sps:$4 sm:$0xff]   ;;  %v3713_v41 = vld [vmem:[%s4347_s4 + $0x60] ss:$8 sps:$4 sm:$0xff]   ;;  %s4902_s18 = sld [smem:[#allocation34_spill]] (!%p3265_p5) }
 0x825   : > { %v3718_v42 = vld [vmem:[%s4347_s4 + $0x74] ss:$8 sps:$4 sm:$0xff]  }
 0x831   : > { %v2013_v46 = vpop.f32.mrb[36].mxu1 }
 0x832   : > { %v3645_v47 = vpack.i.bf16 %v2013_v46, %v1547_v23  ;;  %v3483_v48 = vpop.f32.mrb[37].mxu1  ;;  %v3695_v23 = vld [vmem:[%s4347_s4] ss:$8 sps:$4 sm:$0xff]   ;;  %s4897_s4 = scalar_lea.vmem %s4834_s8, %s4357_s25 }
 0x833   : > { %v2016_v49 = vpop.f32.mrb[38].mxu1  ;;  %2410 = vmatpush1.bf16.msra.mxu1 %v3695_v23 }
 0x834   : > { %3646 = vrot.lane.b32.xlu1 %v3645_v47, %s4011_s1  ;;  %v3484_v52 = vpop.f32.mrb[39].mxu1  ;;  %2411 = vmatprep.subr.bf16.mxu1 %v3700_v26 }
 0x837   : > { %2412 = vmatpush1.bf16.msra.mxu1 %v3698_v27 }
 0x838   : > { %2413 = vmatprep.subr.bf16.mxu1 %v3703_v35 }
 0x839   : > { %v2123_v53 = vpop.f32.mrb[40].mxu1 }
 0x83a   : > { %v3650_v54 = vpack.i.bf16 %v2123_v53, %v1657_v28  ;;  %v3495_v55 = vpop.f32.mrb[41].mxu1 }
 0x83b   : > { %v2126_v56 = vpop.f32.mrb[42].mxu1  ;;  %2414 = vmatpush1.bf16.msra.mxu1 %v3701_v20 }
 0x83c   : > { %3651 = vrot.lane.b32.xlu1 %v3650_v54, %s4010_s3  ;;  %v3496_v59 = vpop.f32.mrb[43].mxu1  ;;  %2415 = vmatprep.subr.bf16.mxu1 %v3706_v24  ;;  %v3228_v54 = vld [vmem:[%s4897_s4] ss:$0 sm:$0xff] }
 0x83f   : > { %2416 = vmatpush1.bf16.msra.mxu1 %v3704_v36 }
 0x840   : > { %2417 = vmatprep.subr.bf16.mxu1 %v3709_v37 }
 0x843   : > { %2418 = vmatpush1.bf16.msra.mxu1 %v3707_v38 }
 0x844   : > { %2419 = vmatprep.subr.bf16.mxu1 %v3712_v21 }
 0x847   : > { %2420 = vmatpush1.bf16.msra.mxu1 %v3710_v39 }
 0x848   : > { %2421 = vmatprep.subr.bf16.mxu1 %v3715_v40 }
 0x84b   : > { %2422 = vmatpush1.bf16.msra.mxu1 %v3713_v41 }
 0x84c   : > { %2423 = vmatprep.subr.bf16.mxu1 %v3718_v42 }
 0x84f   : > { %2424 = vmatpush1.bf16.msra.mxu1 %v3716_v43 }
 0x896   : > { %v3642_v61 = vpop.permute.xlu1 %3641 }
 0x897   : > { %v3644_v63 = vunpack.i.h.bf16 %v3642_v61  ;;  %v3643_v30 = vunpack.i.l.bf16 %v3642_v61  ;;  %v3229_v61 = vld [vmem:[%s4898_s26] ss:$0 sm:$0xff] }
 0x899   : > { %v2141_v4 = vsel %vm1223_vm1, %v1790_v29, %v3644_v63  ;;  %v1675_v5 = vsel %vm1223_vm1, %v4548_v6, %v3643_v30 }
 0x8a6   : > { %v3647_v62 = vpop.permute.xlu1 %3646 }
 0x8a7   : > { %v3649_v0 = vunpack.i.h.bf16 %v3647_v62  ;;  %v3648_v1 = vunpack.i.l.bf16 %v3647_v62 }
 0x8a9   : > { %v2142_v9 = vsel %vm1676_vm4, %v2141_v4, %v3649_v0  ;;  %v1677_v3 = vsel %vm1676_vm4, %v1675_v5, %v3648_v1  ;;  %v3719_v1 = vld [vmem:[%s4349_s0 + $0x40] sm:$0xff]   ;;  %v3721_v4 = vld [vmem:[%s4349_s0 + $0x48] sm:$0xff]  }
 0x8aa   : > { %3341 = vmatprep.subr.bf16.mxu0 %v3719_v1  ;;  %v3722_v5 = vld [vmem:[%s4349_s0 + $0x8] sm:$0xff]  }
 0x8ae   : > { %v3652_v2 = vpop.permute.xlu1 %3651 }
 0x8af   : > { %v3654_v7 = vunpack.i.h.bf16 %v3652_v2  ;;  %v3653_v8 = vunpack.i.l.bf16 %v3652_v2  ;;  %v3720_v2 = vld [vmem:[%s4349_s0] sm:$0xff]  }
 0x8b1   : > { %v2143_v10 = vsel %vm1678_vm5, %v2142_v9, %v3654_v7  ;;  %v1679_v11 = vsel %vm1678_vm5, %v1677_v3, %v3653_v8  ;;  %v3723_v7 = vld [vmem:[%s4349_s0 + $0x50] sm:$0xff]   ;;  %v3725_v9 = vld [vmem:[%s4349_s0 + $0x58] sm:$0xff]  }
 0x8b2   : > { %v2144_v12 = vpack.c.bf16 %v2143_v10, %v1679_v11  ;;  %v3724_v8 = vld [vmem:[%s4349_s0 + $0x10] sm:$0xff]   ;;  %v3726_v3 = vld [vmem:[%s4349_s0 + $0x18] sm:$0xff]   ;;  %v3727_v10 = vld [vmem:[%s4349_s0 + $0x60] sm:$0xff]  }
 0x8b3   : > { %v3728_v11 = vld [vmem:[%s4349_s0 + $0x20] sm:$0xff]  }
 0x8b4   : > { %3514 = vmatmul.mubr.bf16.vlgmr.msra.gmra.mrb[28].mxu0 %v2144_v12  ;;  %v3729_v12 = vld [vmem:[%s4349_s0 + $0x68] sm:$0xff]  }
 0x8b5   : > { %3342 = vmatpush3.bf16.msra.mxu0 %v3720_v2 }
 0x8b6   : > { %3343 = vmatprep.subr.bf16.mxu0 %v3721_v4 }
 0x8b9   : > { %3344 = vmatpush3.bf16.msra.mxu0 %v3722_v5 }
 0x8ba   : > { %3345 = vmatprep.subr.bf16.mxu0 %v3723_v7  ;;  %v3246_v7 = vld [vmem:[%s891_s5] ss:$0 sm:$0xff]  ;;  %s4901_s5 = sld [smem:[#allocation31_spill]] (!%p3265_p5) }
 0x8bd   : > { %3346 = vmatpush3.bf16.msra.mxu0 %v3724_v8 }
 0x8be   : > { %3347 = vmatprep.subr.bf16.mxu0 %v3725_v9 }
 0x8c1   : > { %3348 = vmatpush3.bf16.msra.mxu0 %v3726_v3 }
 0x8c2   : > { %3349 = vmatprep.subr.bf16.mxu0 %v3727_v10 }
 0x8c5   : > { %3350 = vmatpush3.bf16.msra.mxu0 %v3728_v11 }
 0x8c6   : > { %3351 = vmatprep.subr.bf16.mxu0 %v3729_v12 }
 0x987   : > { %v2250_v14 = vpop.f32.mrb[28].mxu0 }
 0x988   : > { %v2251_v15 = vadd.f32 %v3219_v13, %v2250_v14  ;;  %v3515_v6 = vpop.f32.mrb[29].mxu0  ;;  %v3731_v14 = vld [vmem:[%s4349_s0 + $0x70] sm:$0xff]  }
 0x989   : > { %v2253_v16 = vpop.f32.mrb[30].mxu0  ;;  %v3733_v6 = vld [vmem:[%s4349_s0 + $0x78] sm:$0xff]  }
 0x98a   : > { %v2254_v17 = vadd.f32 %v3219_v13, %v2253_v16  ;;  %v3516_v18 = vpop.f32.mrb[31].mxu0  ;;  %v2257_v19 = vadd.f32 %v2251_v15, %v4434_v50  ;;  %v3730_v13 = vld [vmem:[%s4349_s0 + $0x28] sm:$0xff]   ;;  %v3732_v15 = vld [vmem:[%s4349_s0 + $0x30] sm:$0xff]   ;;  %v3734_v16 = vld [vmem:[%s4349_s0 + $0x38] sm:$0xff]  }
 0x98b   : > { %3352 = vmatpush3.bf16.msra.mxu0 %v3730_v13 }
 0x98c   : > { %2261 = vadd.xlane.f32.xlu0 %v2257_v19  ;;  %v2258_v22 = vadd.f32 %v2254_v17, %v4436_v51  ;;  %3353 = vmatprep.subr.bf16.mxu0 %v3731_v14  ;;  %v2317_v17 = vld [vmem:[%s4381_s27] sm:$0x3] }
 0x98d   : > { %v2322_v18 = vrot.slane %v2317_v17, %v987_v58 }
 0x98e   : > { %2263 = vadd.xlane.f32.xlu1 %v2258_v22 }
 0x98f   : > { %3354 = vmatpush3.bf16.msra.mxu0 %v3732_v15 }
 0x990   : > { %3355 = vmatprep.subr.bf16.mxu0 %v3733_v6 }
 0x993   : > { %3356 = vmatpush3.bf16.msra.mxu0 %v3734_v16 }
 0xa19   : > { %v2262_v28 = vpop.xlane.xlu0 %2261 }
 0xa1a   : > { %v2266_v31 = vmul.f32 0.0078125, %v2262_v28 }
 0xa1b   : > { %v2264_v32 = vpop.xlane.xlu1 %2263 }
 0xa1c   : > { %v2268_v50 = vsub.f32 %v2257_v19, %v2266_v31  ;;  %v2267_v51 = vmul.f32 0.0078125, %v2264_v32  ;;  %v2326_v19 = vrot.slane %v2317_v17, %v991_v60 }
 0xa1e   : > { %v2269_v33 = vsub.f32 %v2258_v22, %v2267_v51  ;;  %v2270_v29 = vmul.f32 %v2268_v50, %v2268_v50 }
 0xa20   : > { %2272 = vadd.xlane.f32.xlu0 %v2270_v29  ;;  %v2271_v34 = vmul.f32 %v2269_v33, %v2269_v33 }
 0xa24   : > { %2274 = vadd.xlane.f32.xlu0 %v2271_v34 }
 0xaad   : > { %v2273_v44 = vpop.xlane.xlu0 %2272 }
 0xaae   : > { %v2276_v45 = vmul.f32 0.0078125, %v2273_v44 }
 0xab0   : > { %v2278_v46 = vadd.f32 1e-12, %v2276_v45 }
 0xab1   : > { %v2275_v47 = vpop.xlane.xlu0 %2274 }
 0xab2   : > { %3767 = vrsqrt.f32 %v2278_v46  ;;  %v2277_v48 = vmul.f32 0.0078125, %v2275_v47 }
 0xab4   : > { %v2279_v49 = vadd.f32 1e-12, %v2277_v48 }
 0xab6   : > { %3769 = vrsqrt.f32 %v2279_v49 }
 0xabc   : > { %v3768_v52 = vpop.eup %3767 }
 0xabd   : > { %v2282_v53 = vmul.f32 %v3768_v52, %v2268_v50 }
 0xabf   : > { %v2290_v59 = vmul.f32 %v3228_v54, %v2282_v53 }
 0xac0   : > { %v3770_v55 = vpop.eup %3769 }
 0xac1   : > { %v2283_v56 = vmul.f32 %v3770_v55, %v2269_v33  ;;  %v4691_v63 = vadd.f32 %v3229_v61, %v2290_v59 }
 0xac3   : > { %v2291_v62 = vmul.f32 %v3228_v54, %v2283_v56 }
 0xac5   : > { %v4693_v30 = vadd.f32 %v3229_v61, %v2291_v62 }
 0xac7   : > { %v2300_v0 = vpack.c.bf16 %v4693_v30, %v4691_v63 }
 0xac9   : > { %2442 = vmatmul.mubr.bf16.vlgmr.msra.gmra.mrb[44].mxu1 %v2300_v0 }
 0xb9c   : > { %v2443_v22 = vpop.f32.mrb[44].mxu1 }
 0xb9d   : > { %v2444_v23 = vadd.f32 %v2443_v22, %v2322_v18  ;;  %v2445_v25 = vpop.f32.mrb[45].mxu1 }
 0xb9e   : > { %v2446_v26 = vadd.f32 %v2445_v25, %v2326_v19  ;;  %v2447_v27 = vpop.f32.mrb[46].mxu1 }
 0xb9f   : > { %v2452_v28 = vmul.f32 %v2444_v23, %v2444_v23  ;;  %v2448_v31 = vadd.f32 %v2447_v27, %v2322_v18  ;;  %v2449_v32 = vpop.f32.mrb[47].mxu1 }
 0xba0   : > { %v2453_v50 = vmul.f32 %v2446_v26, %v2446_v26  ;;  %v2450_v51 = vadd.f32 %v2449_v32, %v2326_v19 }
 0xba1   : > { %v2456_v33 = vmul.f32 %v2452_v28, %v2444_v23  ;;  %v2454_v29 = vmul.f32 %v2448_v31, %v2448_v31 }
 0xba2   : > { %v2457_v34 = vmul.f32 %v2453_v50, %v2446_v26  ;;  %v2455_v35 = vmul.f32 %v2450_v51, %v2450_v51  ;;  %v3263_v50 = vld [vmem:[%s894_s20] ss:$0 sm:$0xff]  ;;  %s4899_s20 = sld [smem:[#allocation30_spill]] (!%p3265_p5) }
 0xba3   : > { %v2460_v20 = vmul.f32 0.044715, %v2456_v33  ;;  %v2458_v24 = vmul.f32 %v2454_v29, %v2448_v31  ;;  %v3264_v29 = vld [vmem:[%s897_s22] ss:$0 sm:$0xff] }
 0xba4   : > { %v2461_v58 = vmul.f32 0.044715, %v2457_v34  ;;  %v2459_v36 = vmul.f32 %v2455_v35, %v2450_v51 }
 0xba5   : > { %v2464_v57 = vadd.f32 %v2460_v20, %v2444_v23  ;;  %v2462_v60 = vmul.f32 0.044715, %v2458_v24 }
 0xba6   : > { %v2465_v37 = vadd.f32 %v2461_v58, %v2446_v26  ;;  %v2463_v38 = vmul.f32 0.044715, %v2459_v36 }
 0xba7   : > { %v2468_v21 = vmul.f32 0.7978846, %v2464_v57  ;;  %v2466_v39 = vadd.f32 %v2462_v60, %v2448_v31  ;;  %v4013_v57 = vmov (!%p3265_p5), 0.0  }
 0xba8   : > { %v2469_v40 = vmul.f32 0.7978846, %v2465_v37  ;;  %v2467_v41 = vadd.f32 %v2463_v38, %v2450_v51  ;;  %v3783_v36 = vld [vmem:[%s4899_s20] sm:$0xff] (!%p3265_p5)   ;;  %3517 = vmatprep.subr.bf16.mxu0 (!%p3265_p5), %v4013_v57  ;;  %3537 = vmatprep.subr.bf16.mxu1 (!%p3265_p5), %v4013_v57  ;;  %v3784_v60 = vld [vmem:[%s4899_s20 + $0x8] sm:$0xff] (!%p3265_p5)   ;;  %v3785_v37 = vld [vmem:[%s4899_s20 + $0x10] sm:$0xff] (!%p3265_p5)  }
 0xba9   : > { %3771 = vtanh.f32 %v2468_v21  ;;  %v2470_v42 = vmul.f32 0.7978846, %v2466_v39  ;;  %3553 = vmatprep.mubr.msk.bf16.mxu1 (!%p3265_p5), %vm4014_vm6, %v4013_v57  ;;  %v3791_v38 = vld [vmem:[%s4900_s30] sm:$0xff] (!%p3265_p5)   ;;  %v3786_v21 = vld [vmem:[%s4899_s20 + $0x18] sm:$0xff] (!%p3265_p5)   ;;  %v3792_v39 = vld [vmem:[%s4900_s30 + $0x8] sm:$0xff] (!%p3265_p5)  }
 0xbaa   : > { %3773 = vtanh.f32 %v2469_v40  ;;  %v2471_v43 = vmul.f32 0.7978846, %v2467_v41  ;;  %3538 = vmatpush3.bf16.msra.mxu1 (!%p3265_p5), %v3791_v38  ;;  %v3787_v40 = vld [vmem:[%s4899_s20 + $0x20] sm:$0xff] (!%p3265_p5)   ;;  %v3793_v41 = vld [vmem:[%s4900_s30 + $0x10] sm:$0xff] (!%p3265_p5)  }
 0xbab   : > { %3775 = vtanh.f32 %v2470_v42  ;;  %3539 = vmatprep.subr.bf16.mxu1 (!%p3265_p5), %v4013_v57  ;;  %v3788_v42 = vld [vmem:[%s4899_s20 + $0x28] sm:$0xff] (!%p3265_p5)  }
 0xbac   : > { %3777 = vtanh.f32 %v2471_v43  ;;  %v3794_v43 = vld [vmem:[%s4900_s30 + $0x18] sm:$0xff] (!%p3265_p5)  }
 0xbae   : > { %3540 = vmatpush3.bf16.msra.mxu1 (!%p3265_p5), %v3792_v39 }
 0xbaf   : > { %3541 = vmatprep.subr.bf16.mxu1 (!%p3265_p5), %v4013_v57 }
 0xbb2   : > { %3542 = vmatpush3.bf16.msra.mxu1 (!%p3265_p5), %v3793_v41 }
 0xbb3   : > { %v3772_v44 = vpop.eup %3771  ;;  %3543 = vmatprep.subr.bf16.mxu1 (!%p3265_p5), %v4013_v57 }
 0xbb4   : > { %v3774_v45 = vpop.eup %3773  ;;  %v2476_v46 = vadd.f32 1.0, %v3772_v44  ;;  %v3789_v44 = vld [vmem:[%s4899_s20 + $0x30] sm:$0xff] (!%p3265_p5)  }
 0xbb5   : > { %v3776_v47 = vpop.eup %3775  ;;  %v2477_v48 = vadd.f32 1.0, %v3774_v45 }
 0xbb6   : > { %v3778_v49 = vpop.eup %3777  ;;  %v2480_v52 = vmul.f32 0.5, %v2476_v46  ;;  %v2478_v53 = vadd.f32 1.0, %v3776_v47  ;;  %3544 = vmatpush3.bf16.msra.mxu1 (!%p3265_p5), %v3794_v43  ;;  %v3790_v46 = vld [vmem:[%s4899_s20 + $0x38] sm:$0xff] (!%p3265_p5)  }
 0xbb7   : > { %v2479_v54 = vadd.f32 1.0, %v3778_v49  ;;  %v2481_v55 = vmul.f32 0.5, %v2477_v48  ;;  %3545 = vmatprep.subr.bf16.mxu1 (!%p3265_p5), %v4013_v57  ;;  %v3795_v49 = vld [vmem:[%s4900_s30 + $0x20] sm:$0xff] (!%p3265_p5)  }
 0xbb8   : > { %v2482_v56 = vmul.f32 0.5, %v2478_v53  ;;  %v2484_v61 = vmul.f32 %v2480_v52, %v2444_v23  ;;  %v3796_v52 = vld [vmem:[%s4900_s30 + $0x28] sm:$0xff] (!%p3265_p5)   ;;  %v3797_v53 = vld [vmem:[%s4900_s30 + $0x30] sm:$0xff] (!%p3265_p5)  }
 0xbb9   : > { %v2483_v59 = vmul.f32 0.5, %v2479_v54  ;;  %v2485_v0 = vmul.f32 %v2481_v55, %v2446_v26  ;;  %v3798_v54 = vld [vmem:[%s4900_s30 + $0x38] sm:$0xff] (!%p3265_p5)   ;;  %v3266_v55 = vld [vmem:[%s4901_s5] ss:$0 sm:$0xff] (!%p3265_p5) }
 0xbba   : > { %v2486_v62 = vmul.f32 %v2482_v56, %v2448_v31  ;;  %3546 = vmatpush3.bf16.msra.mxu1 (!%p3265_p5), %v3795_v49 }
 0xbbb   : > { %v2487_v1 = vmul.f32 %v2483_v59, %v2450_v51  ;;  %3547 = vmatprep.subr.bf16.mxu1 (!%p3265_p5), %v4013_v57 }
 0xbbc   : > { %v2488_v2 = vpack.c.bf16 %v2486_v62, %v2484_v61 }
 0xbbd   : > { %v2489_v4 = vpack.c.bf16 %v2487_v1, %v2485_v0 }
 0xbbe   : > { %3548 = vmatpush3.bf16.msra.mxu1 (!%p3265_p5), %v3796_v52 }
 0xbbf   : > { %2657 = vmatprep.mubr.bf16.mxu0 %v2489_v4  ;;  %3549 = vmatprep.subr.bf16.mxu1 (!%p3265_p5), %v4013_v57  ;;  %v3275_v4 = vld [vmem:[#allocation3] ss:$0 sm:$0xff] (!%p3265_p5) }
 0xbc0   : > { %2658 = vmatmul.mubr.bf16.vlgmr.msra.gmra.mrb[32].mxu0 %v2488_v2 }
 0xbc1   : > { %3518 = vmatpush3.bf16.msra.mxu0 (!%p3265_p5), %v3783_v36  ;;  %3533 = vmatprep.mubr.msk.bf16.mxu0 (!%p3265_p5), %vm4014_vm6, %v4013_v57 }
 0xbc2   : > { %3519 = vmatprep.subr.bf16.mxu0 (!%p3265_p5), %v4013_v57  ;;  %3550 = vmatpush3.bf16.msra.mxu1 (!%p3265_p5), %v3797_v53 }
 0xbc3   : > { %3551 = vmatprep.subr.bf16.mxu1 (!%p3265_p5), %v4013_v57 }
 0xbc5   : > { %3520 = vmatpush3.bf16.msra.mxu0 (!%p3265_p5), %v3784_v60 }
 0xbc6   : > { %3521 = vmatprep.subr.bf16.mxu0 (!%p3265_p5), %v4013_v57  ;;  %3552 = vmatpush3.bf16.msra.mxu1 (!%p3265_p5), %v3798_v54 }
 0xbc9   : > { %3522 = vmatpush3.bf16.msra.mxu0 (!%p3265_p5), %v3785_v37 }
 0xbca   : > { %3523 = vmatprep.subr.bf16.mxu0 (!%p3265_p5), %v4013_v57 }
 0xbcd   : > { %3524 = vmatpush3.bf16.msra.mxu0 (!%p3265_p5), %v3786_v21 }
 0xbce   : > { %3525 = vmatprep.subr.bf16.mxu0 (!%p3265_p5), %v4013_v57 }
 0xbd1   : > { %3526 = vmatpush3.bf16.msra.mxu0 (!%p3265_p5), %v3787_v40 }
 0xbd2   : > { %3527 = vmatprep.subr.bf16.mxu0 (!%p3265_p5), %v4013_v57 }
 0xbd5   : > { %3528 = vmatpush3.bf16.msra.mxu0 (!%p3265_p5), %v3788_v42 }
 0xbd6   : > { %3529 = vmatprep.subr.bf16.mxu0 (!%p3265_p5), %v4013_v57 }
 0xbd9   : > { %3530 = vmatpush3.bf16.msra.mxu0 (!%p3265_p5), %v3789_v44 }
 0xbda   : > { %3531 = vmatprep.subr.bf16.mxu0 (!%p3265_p5), %v4013_v57 }
 0xbdd   : > { %3532 = vmatpush3.bf16.msra.mxu0 (!%p3265_p5), %v3790_v46 }
 0xc93   : > { %v3357_v5 = vpop.f32.mrb[32].mxu0 }
 0xc94   : > { %v3358_v8 = vpop.f32.mrb[33].mxu0 }
 0xc95   : > { %v3359_v9 = vadd.f32 %v3358_v8, %v3357_v5  ;;  %v3360_v3 = vpop.f32.mrb[34].mxu0 }
 0xc96   : > { %v3361_v10 = vpop.f32.mrb[35].mxu0 }
 0xc97   : > { %v2660_v11 = vadd.f32 %v3359_v9, %v3246_v7  ;;  %v3362_v12 = vadd.f32 %v3361_v10, %v3360_v3 }
 0xc99   : > { %v2663_v13 = vadd.f32 %v3362_v12, %v3246_v7  ;;  %v2666_v14 = vadd.f32 %v2660_v11, %v4691_v63 }
 0xc9b   : > { %2670 = vadd.xlane.f32.xlu1 %v2666_v14  ;;  %v2667_v15 = vadd.f32 %v2663_v13, %v4693_v30 }
 0xc9d   : > { %2672 = vadd.xlane.f32.xlu0 %v2667_v15 }
 0xd28   : > { %v2671_v6 = vpop.xlane.xlu1 %2670 }
 0xd29   : > { %v2674_v16 = vmul.f32 0.0078125, %v2671_v6 }
 0xd2a   : > { %v2673_v17 = vpop.xlane.xlu0 %2672 }
 0xd2b   : > { %v2676_v18 = vsub.f32 %v2666_v14, %v2674_v16  ;;  %v2675_v19 = vmul.f32 0.0078125, %v2673_v17 }
 0xd2d   : > { %v2677_v22 = vsub.f32 %v2667_v15, %v2675_v19  ;;  %v2678_v23 = vmul.f32 %v2676_v18, %v2676_v18 }
 0xd2f   : > { %2680 = vadd.xlane.f32.xlu1 %v2678_v23  ;;  %v2679_v25 = vmul.f32 %v2677_v22, %v2677_v22 }
 0xd31   : > { %2682 = vadd.xlane.f32.xlu0 %v2679_v25 }
 0xdbc   : > { %v2681_v26 = vpop.xlane.xlu1 %2680 }
 0xdbd   : > { %v2684_v27 = vmul.f32 0.0078125, %v2681_v26 }
 0xdbe   : > { %v2683_v28 = vpop.xlane.xlu0 %2682 }
 0xdbf   : > { %v2686_v63 = vadd.f32 1e-12, %v2684_v27  ;;  %v2685_v31 = vmul.f32 0.0078125, %v2683_v28 }
 0xdc1   : > { %3779 = vrsqrt.f32 %v2686_v63  ;;  %v2687_v30 = vadd.f32 1e-12, %v2685_v31 }
 0xdc3   : > { %3781 = vrsqrt.f32 %v2687_v30 }
 0xdcb   : > { %v3780_v32 = vpop.eup %3779 }
 0xdcc   : > { %v2690_v51 = vmul.f32 %v3780_v32, %v2676_v18 }
 0xdcd   : > { %v3782_v33 = vpop.eup %3781 }
 0xdce   : > { %v2698_v34 = vmul.f32 %v3263_v50, %v2690_v51  ;;  %v2691_v35 = vmul.f32 %v3782_v33, %v2677_v22  ;;  %2713 = sbr.rel (%p3265_p5) target bundleno = 3998 (0xf9e), region = 124 }
 0xdd0   : > { %v2706_v20 = vadd.f32 %v3264_v29, %v2698_v34  ;;  %v2699_v24 = vmul.f32 %v3263_v50, %v2691_v35 }
 0xdd2   : > { %2708 = vst [vmem:[#allocation2] sm:$0xff] %v2706_v20  ;;  %v2707_v58 = vadd.f32 %v3264_v29, %v2699_v24 }
 0xdd4   : > { %2709 = vst [vmem:[#allocation2 + $0x8] sm:$0xff] %v2707_v58  ;;  %v2715_v45 = vrot.slane (!%p3265_p5), %v2707_v58, 7 }
 0xdd6   : > { %v2718_v47 = vsel %vm2717_vm7, %v2706_v20, %v2715_v45 }
 0xdd7   : > { %v2719_v48 = vpack.c.bf16 %v2718_v47, %v2718_v47 }
 0xdd9   : > { %3534 = vmatmul.mubr.bf16.vlgmr.msra.gmra.mrb[0].mxu0 %v2719_v48 }
 0xeac   : > { %v2825_v56 = vpop.f32.mrb[0].mxu0 }
 0xead   : > { %v2826_v59 = vadd.f32 %v3266_v55, %v2825_v56  ;;  %v3535_v61 = vpop.f32.mrb[1].mxu0 }
 0xeae   : > { %v2828_v62 = vpop.f32.mrb[2].mxu0 }
 0xeaf   : > { %3799 = vtanh.f32 %v2826_v59  ;;  %v3536_v0 = vpop.f32.mrb[3].mxu0 }
 0xeb9   : > { %v3800_v1 = vpop.eup %3799 }
 0xeba   : > { %2832 = vst [vmem:[#allocation12] sm:$0x3] %v3800_v1  ;;  %v2833_v2 = vpack.c.bf16 %v3800_v1, %v3800_v1 }
 0xebc   : > { %3554 = vmatmul.mubr.bf16.vlgmr.msra.gmra.mrb[0].mxu1 %v2833_v2 }
 0xf8f   : > { %v2939_v5 = vpop.f32.mrb[0].mxu1 }
 0xf90   : > { %v2940_v7 = vadd.f32 %v3275_v4, %v2939_v5  ;;  %v3555_v8 = vpop.f32.mrb[1].mxu1 }
 0xf91   : > { %v2942_v9 = vpop.f32.mrb[2].mxu1 }
 0xf92   : > { %3801 = vtanh.f32 %v2940_v7  ;;  %v3556_v3 = vpop.f32.mrb[3].mxu1 }
 0xf9c   : > { %v3802_v10 = vpop.eup %3801 }
 0xf9d   : > { %2947 = vst.msk [vmem:[%s4902_s18] sm:$0x3] %vm2946_vm8, %v3802_v10 }
 0xf9e PF: > { %p3587_p6 = scmp.eq.s32.totalorder %s4148_s19, 1  ;;  %s4015_s24 = smov [#allocation12]  }
 0xf9f   : > { %s2955_s23 = sshll.u32 %s4015_s24, 4  ;;  %s2956_s23 = int_to_ptr.vmem [resolvable:$true] %s2955_s23 }
 0xfa0   : > { %s3923_s25 = scalar_lea.vmem %s2956_s23, 32  ;;  %p3930_p13 = scmp.lt.s32.totalorder %s2956_s23, %s2956_s23 }
 0xfa1   : > { %p3924_p1 = scmp.ne.s32.totalorder %s2956_s23, %s3923_s25  ;;  %p3931_p9 = scmp.lt.s32.totalorder %s3923_s25, %s3923_s25 }
 0xfa3   : > { %p3925_p4 = pnand %p3924_p1, %p3587_p6  ;;  %p3932_p0 = por %p3931_p9, %p3930_p13 }
 0xfa5   : > { %p3926_p11 = pneg %p3925_p4 }
 0xfa7   : > { %p3933_p12 = pnand %p3932_p0, %p3926_p11 }
 0xfa9   : > { %3936 = shalt.err (!%p3933_p12)
}
 0xfaa   : > { %s4903_s17 = sld [smem:[#allocation33_spill]] }
 0xfb0   : > { %s3937_s29 = scalar_lea.hbm %s4903_s17, 32 }
 0xfb1   : > { %p3938_p2 = scmp.ne.s32.totalorder %s4903_s17, %s3937_s29  ;;  %p3943_p8 = scmp.lt.u32.totalorder %s3937_s29, %s4903_s17 }
 0xfb3   : > { %p3939_p10 = pnand %p3938_p2, %p3587_p6 }
 0xfb5   : > { %p3940_p7 = pneg %p3939_p10 }
 0xfb7   : > { %p3945_p3 = pnand %p3943_p8, %p3940_p7 }
 0xfb9   : > { %3948 = shalt.err (!%p3945_p3)
}
 0xfba   : > { %3570 = dma.vmem_to_hbm [thread:$0]  (%p3587_p6), %s2956_s23, 32, %s4903_s17, [#allocation6]  }
 0xfbb   : > { %3978 = dma.done.wait (%p3587_p6), [#allocation6], 32  }
 0xfbc   : > { %3980 = vsyncadd (%p3587_p6), [#allocation6], 4294967264 }
 0xfbd PF: > { %s4904_s28 = sld [smem:[#allocation19_spill]]  ;;  %s4905_s26 = sld [smem:[#allocation17_spill]] }
 0xfbe   : > { %s4906_s27 = sld [smem:[#allocation18_spill]]  ;;  %s4907_s3 = sld [smem:[#allocation20_spill]] }
 0xfc3   : > { %p41_p5 = scmp.ge.s32.totalorder %s4904_s28, 4  }
 0xfc5   :  { %43 = sbr.rel (!%p41_p5) target bundleno = 23 (0x17), region = 215 }
 0xfcc   :  { %2974 = vsyncpa [#allocation5], 1 }
 0xfcd   :  { %2976 = vsyncpa [#allocation5 + $0x1], 1 }
 0xfce   :  { %2977 = vsyncpa [#allocation8], 1 }
 0xfcf   :  { %2979 = vsyncpa [#allocation8 + $0x1], 1 }
 0xfd0   :  { %2980 = vsyncpa [#allocation11], 1 }
 0xfd1   :  { %2982 = vsyncpa [#allocation11 + $0x1], 1 }
 0xfd2   :  { %2983 = vsyncpa [#allocation6], 1 }
 0xfd3   :  { %2985 = vsyncpa [#allocation6 + $0x1], 1 }

</bundles_post_ra>
